<compile_context>
chip_gen: v7x
topology: tpu7x:2x2x1
jax: 0.10.0
libtpu: 0.0.40
codegen_flags: <defaults>
</compile_context>

<pallas_src>
import math

import jax
import jax.numpy as jnp
from jax.experimental import pallas as pl
from jax.experimental.pallas import tpu as pltpu

# ----------------------------- model config ---------------------------------
NUM_INPUTS = 8
NUM_ACTIONS = 4
NUM_ATOMS = 51
H1 = 128                       # linear1 / linear2 width
H2 = 512                       # noisy1 width
OUT = NUM_ACTIONS * NUM_ATOMS  # noisy2 output width (204)

BATCH = 8                      # demo batch
BATCH_TILE = 256               # large-batch tile (fills 256-wide v6e/v7x MXU)


def _roundup(n, m):
    return ((n + m - 1) // m) * m


# Packed layout of the small f32 operands.
# Row pack [1, ROWPACK_W]: biases + e_out noise row-vectors, every segment
# starting on a 128-lane boundary so in-kernel slices never relayout.
_B1_OFF = 0
_B2_OFF = _B1_OFF + _roundup(H1, 128)      # 128
_B3_OFF = _B2_OFF + _roundup(H1, 128)      # 256
_B4_OFF = _B3_OFF + _roundup(H2, 128)      # 768
_E3O_OFF = _B4_OFF + _roundup(OUT, 128)    # 1024
_E4O_OFF = _E3O_OFF + _roundup(H2, 128)    # 1536
ROWPACK_W = _E4O_OFF + _roundup(OUT, 128)  # 1792
# Column pack [COLPACK_H, 1]: e_in noise column-vectors (weight sigma folded in).
COLPACK_H = H1 + H2                        # 640


def _unpack_row(rp):
    """Slice the row pack.  Works on a Ref (in-kernel) or an array (wrapper)."""
    b1 = rp[:, _B1_OFF:_B1_OFF + H1]
    b2 = rp[:, _B2_OFF:_B2_OFF + H1]
    b3 = rp[:, _B3_OFF:_B3_OFF + H2]
    b4 = rp[:, _B4_OFF:_B4_OFF + OUT]
    e3o = rp[:, _E3O_OFF:_E3O_OFF + H2]
    e4o = rp[:, _E4O_OFF:_E4O_OFF + OUT]
    return b1, b2, b3, b4, e3o, e4o


def _unpack_col(cp):
    return cp[0:H1, :], cp[H1:H1 + H2, :]


# ------------------------------ kernel bodies --------------------------------
def _mlp_softmax(x, w1, b1, w2, b2, w3, b3, w4, b4, out_ref):
    """Shared MLP + per-action softmax.  Weights bf16, accumulation f32
    (single-pass MXU mode on v5e/v6e/v7x)."""
    f32, bf16 = jnp.float32, jnp.bfloat16

    h = jnp.dot(x.astype(bf16), w1, preferred_element_type=f32)
    h = jnp.maximum(h + b1, 0.0)
    h = jnp.dot(h.astype(bf16), w2, preferred_element_type=f32)
    h = jnp.maximum(h + b2, 0.0)
    h = jnp.dot(h.astype(bf16), w3, preferred_element_type=f32)
    h = jnp.maximum(h + b3, 0.0)
    logits = jnp.dot(h.astype(bf16), w4, preferred_element_type=f32) + b4

    # Per-(row, action) softmax over atoms as a full-width masked softmax:
    # no 51-lane slices and a single lane-dense store.
    rows = logits.shape[0]
    col = jax.lax.broadcasted_iota(jnp.int32, (rows, OUT), 1)
    neg = jnp.float32(-1e30)
    masks = []
    m_full = jnp.zeros_like(logits)
    for a in range(NUM_ACTIONS):
        m = (col >= a * NUM_ATOMS) & (col < (a + 1) * NUM_ATOMS)
        masks.append(m)
        m_a = jnp.max(jnp.where(m, logits, neg), axis=-1, keepdims=True)
        m_full = jnp.where(m, m_a, m_full)
    e = jnp.exp(logits - m_full)
    d_full = jnp.ones_like(logits)
    for a in range(NUM_ACTIONS):
        s_a = jnp.sum(jnp.where(masks[a], e, 0.0), axis=-1, keepdims=True)
        d_full = jnp.where(masks[a], s_a, d_full)
    # exact divide: keeps per-row sums at 1 within f32 rounding
    out_ref[...] = (e / d_full).astype(out_ref.dtype)


def dqn_kernel_fused(x_ref, w1_ref, w2_ref, w3mu_ref, w4mu_ref,
                     rowpack_ref, colpack_ref, out_ref):
    """Small-batch kernel: noisy effective weights built in VMEM (bf16), so
    they never round-trip HBM."""
    bf16 = jnp.bfloat16
    b1, b2, b3, b4, e3o, e4o = _unpack_row(rowpack_ref)
    e3i, e4i = _unpack_col(colpack_ref)
    w3 = w3mu_ref[...] + (e3i * e3o).astype(bf16)
    w4 = w4mu_ref[...] + (e4i * e4o).astype(bf16)
    _mlp_softmax(x_ref[...], w1_ref[...], b1, w2_ref[...], b2,
                 w3, b3, w4, b4, out_ref)


def dqn_kernel_prew(x_ref, w1_ref, w2_ref, w3_ref, w4_ref,
                    rowpack_ref, out_ref):
    """Large-batch kernel: bf16 W_eff prebuilt once in the wrapper and kept
    VMEM-resident across grid steps (no per-step rebuild)."""
    b1, b2, b3, b4, _, _ = _unpack_row(rowpack_ref)
    _mlp_softmax(x_ref[...], w1_ref[...], b1, w2_ref[...], b2,
                 w3_ref[...], b3, w4_ref[...], b4, out_ref)


# --------------------------------- wrappers -----------------------------------
def _call_gridless(kernel, args, rows):
    vmem = pl.BlockSpec(memory_space=pltpu.MemorySpace.VMEM)
    return pl.pallas_call(
        kernel,
        out_shape=jax.ShapeDtypeStruct((rows, OUT), jnp.float32),
        in_specs=[vmem] * len(args),
        out_specs=vmem,
    )(*args)


def _call_tiled(kernel, x, const_args, tile_b):
    rows = x.shape[0]
    in_specs = [pl.BlockSpec((tile_b, NUM_INPUTS), lambda i: (i, 0))]
    for p in const_args:
        # same whole block every step -> stays VMEM-resident across the grid
        in_specs.append(pl.BlockSpec(p.shape, lambda i: (0, 0)))
    return pl.pallas_call(
        kernel,
        out_shape=jax.ShapeDtypeStruct((rows, OUT), jnp.float32),
        grid_spec=pltpu.PrefetchScalarGridSpec(
            num_scalar_prefetch=0,
            grid=(rows // tile_b,),
            in_specs=in_specs,
            out_specs=pl.BlockSpec((tile_b, OUT), lambda i: (i, 0)),
        ),
        compiler_params=pltpu.CompilerParams(
            dimension_semantics=("parallel",)),
    )(x, *const_args)


def _build_weff_bf16(w_mu_bf16, e_in, e_out):
    # Same formula as the fused kernel so every path agrees numerically.
    return w_mu_bf16 + (e_in * e_out).astype(jnp.bfloat16)


def categorical_dqn_forward(x, params):
    B = x.shape[0]
    p = params
    if B <= 8:
        # tiny batch: gridless, everything whole-array VMEM resident
        Bp = 8
        xp = x if Bp == B else jnp.pad(x, ((0, Bp - B), (0, 0)))
        out = _call_gridless(
            dqn_kernel_fused,
            (xp, p["w1"], p["w2"], p["w3mu"], p["w4mu"],
             p["rowpack"], p["colpack"]),
            Bp)
    elif B <= BATCH_TILE:
        # small batch: 2-step "parallel" grid so both v7x TensorCores get half;
        # W_eff still built in-kernel (never written to HBM)
        Bp = _roundup(B, 16)
        xp = x if Bp == B else jnp.pad(x, ((0, Bp - B), (0, 0)))
        out = _call_tiled(
            dqn_kernel_fused, xp,
            (p["w1"], p["w2"], p["w3mu"], p["w4mu"],
             p["rowpack"], p["colpack"]),
            Bp // 2)
    else:
        # large batch: prebuild bf16 W_eff once, amortized over all tiles
        Bp = _roundup(B, BATCH_TILE)
        xp = x if Bp == B else jnp.pad(x, ((0, Bp - B), (0, 0)))
        _, _, _, _, e3o, e4o = _unpack_row(p["rowpack"])
        e3i, e4i = _unpack_col(p["colpack"])
        w3 = _build_weff_bf16(p["w3mu"], e3i, e3o)
        w4 = _build_weff_bf16(p["w4mu"], e4i, e4o)
        out = _call_tiled(
            dqn_kernel_prew, xp,
            (p["w1"], p["w2"], w3, w4, p["rowpack"]),
            BATCH_TILE)
    # TODO(synk): emit bf16 output if the downstream C51 projection/loss
    # tolerates it (halves the per-tile HBM writeback).
    return out[:B].reshape(B, NUM_ACTIONS, NUM_ATOMS)


# --------------------------- parameter construction --------------------------
def _linear_init(key, fan_in, fan_out):
    # PyTorch nn.Linear default: U(-1/sqrt(fan_in), 1/sqrt(fan_in))
    kw, kb = jax.random.split(key)
    bound = 1.0 / math.sqrt(fan_in)
    w = jax.random.uniform(kw, (fan_in, fan_out), jnp.float32, -bound, bound)
    b = jax.random.uniform(kb, (fan_out,), jnp.float32, -bound, bound)
    return w.astype(jnp.bfloat16), b


def _noisy_linear_init(key, fan_in, fan_out, std_init=0.4):
    # Standard PyTorch NoisyLinear (factorized Gaussian noise):
    #   weight_sigma = std_init/sqrt(in),  bias_sigma = std_init/sqrt(out),
    #   weight_eps = f(eps_out) ⊗ f(eps_in),  bias_eps = independent f(eps_b).
    kmu_w, kmu_b, kin, kout, kb = jax.random.split(key, 5)
    mu_bound = 1.0 / math.sqrt(fan_in)
    w_mu = jax.random.uniform(kmu_w, (fan_in, fan_out), jnp.float32,
                              -mu_bound, mu_bound)
    b_mu = jax.random.uniform(kmu_b, (fan_out,), jnp.float32,
                              -mu_bound, mu_bound)
    w_sigma = std_init / math.sqrt(fan_in)
    b_sigma = std_init / math.sqrt(fan_out)

    def f(e):
        return jnp.sign(e) * jnp.sqrt(jnp.abs(e))

    eps_in = f(jax.random.normal(kin, (fan_in,), jnp.float32))
    eps_out = f(jax.random.normal(kout, (fan_out,), jnp.float32))
    eps_b = f(jax.random.normal(kb, (fan_out,), jnp.float32))

    e_in = (w_sigma * eps_in)[:, None]       # [fan_in, 1] f32 (sigma folded)
    e_out = eps_out[None, :]                 # [1, fan_out] f32
    b_eff = b_mu + b_sigma * eps_b           # effective noisy bias, [fan_out]
    return w_mu.astype(jnp.bfloat16), e_in, e_out, b_eff


def make_params(key):
    k1, k2, k3, k4 = jax.random.split(key, 4)
    w1, b1 = _linear_init(k1, NUM_INPUTS, H1)
    w2, b2 = _linear_init(k2, H1, H1)
    w3mu, e3i, e3o, b3 = _noisy_linear_init(k3, H1, H2)
    w4mu, e4i, e4o, b4 = _noisy_linear_init(k4, H2, OUT)

    rowpack = jnp.zeros((1, ROWPACK_W), jnp.float32)
    rowpack = rowpack.at[0, _B1_OFF:_B1_OFF + H1].set(b1)
    rowpack = rowpack.at[0, _B2_OFF:_B2_OFF + H1].set(b2)
    rowpack = rowpack.at[0, _B3_OFF:_B3_OFF + H2].set(b3)
    rowpack = rowpack.at[0, _B4_OFF:_B4_OFF + OUT].set(b4)
    rowpack = rowpack.at[0, _E3O_OFF:_E3O_OFF + H2].set(e3o[0])
    rowpack = rowpack.at[0, _E4O_OFF:_E4O_OFF + OUT].set(e4o[0])
    colpack = jnp.concatenate([e3i, e4i], axis=0)        # [640, 1] f32
    return dict(w1=w1, w2=w2, w3mu=w3mu, w4mu=w4mu,
                rowpack=rowpack, colpack=colpack)


# ------------------------------ pure-JAX reference ---------------------------
def reference_forward(x, params):
    f32, bf16 = jnp.float32, jnp.bfloat16
    p = params
    b1, b2, b3, b4, e3o, e4o = _unpack_row(p["rowpack"])
    e3i, e4i = _unpack_col(p["colpack"])

    def dot(a, b):
        return jnp.dot(a.astype(bf16), b, preferred_element_type=f32)

    h = jnp.maximum(dot(x, p["w1"]) + b1, 0.0)
    h = jnp.maximum(dot(h, p["w2"]) + b2, 0.0)
    w3 = _build_weff_bf16(p["w3mu"], e3i, e3o)
    h = jnp.maximum(dot(h, w3) + b3, 0.0)
    w4 = _build_weff_bf16(p["w4mu"], e4i, e4o)
    logits = dot(h, w4) + b4
    probs = jax.nn.softmax(logits.reshape(-1, NUM_ATOMS), axis=-1)
    return probs.reshape(-1, NUM_ACTIONS, NUM_ATOMS)


# ---------------------------------- main -------------------------------------
if __name__ == "__main__":
    key = jax.random.PRNGKey(0)
    kx, kp = jax.random.split(key)
    x = jax.random.normal(kx, (BATCH, NUM_INPUTS), jnp.float32)
    params = make_params(kp)

    out = categorical_dqn_forward(x, params)
    out = jax.block_until_ready(out)

    assert out.shape == (BATCH, NUM_ACTIONS, NUM_ATOMS)

    # each per-action atom distribution must sum to 1 (exact-divide softmax)
    sums = jnp.sum(out, axis=-1)
    max_sum_err = float(jnp.max(jnp.abs(sums - 1.0)))
    assert max_sum_err < 1e-3, max_sum_err

    # cross-check against the pure-JAX reference of the same bf16/f32 math
    ref = reference_forward(x, params)
    max_diff = float(jnp.max(jnp.abs(out - ref)))
    assert max_diff < 2e-3, max_diff

    print("KERNEL_OK")
</pallas_src>

<mosaic_0001>
module attributes {stable_mosaic.version = 11 : i64} {
  func.func @dqn_kernel_fused(%arg0: memref<8x8xf32, #tpu.memory_space<vmem>>, %arg1: memref<8x128xbf16, #tpu.memory_space<vmem>>, %arg2: memref<128x128xbf16, #tpu.memory_space<vmem>>, %arg3: memref<128x512xbf16, #tpu.memory_space<vmem>>, %arg4: memref<512x204xbf16, #tpu.memory_space<vmem>>, %arg5: memref<1x1792xf32, #tpu.memory_space<vmem>>, %arg6: memref<640x1xf32, #tpu.memory_space<vmem>>, %arg7: memref<8x204xf32, #tpu.memory_space<vmem>>) attributes {dimension_semantics = [], scalar_prefetch = 0 : i64, scratch_operands = 0 : i64, tpu.core_type = #tpu.core_type<tc>} {
    %c0 = arith.constant 0 : index
    %c0_0 = arith.constant 0 : index
    %0 = vector.load %arg5[%c0, %c0_0] : memref<1x1792xf32, #tpu.memory_space<vmem>>, vector<1x128xf32>
    %c0_1 = arith.constant 0 : index
    %c128 = arith.constant 128 : index
    %1 = vector.load %arg5[%c0_1, %c128] : memref<1x1792xf32, #tpu.memory_space<vmem>>, vector<1x128xf32>
    %c0_2 = arith.constant 0 : index
    %c256 = arith.constant 256 : index
    %2 = vector.load %arg5[%c0_2, %c256] : memref<1x1792xf32, #tpu.memory_space<vmem>>, vector<1x512xf32>
    %c0_3 = arith.constant 0 : index
    %c768 = arith.constant 768 : index
    %3 = vector.load %arg5[%c0_3, %c768] : memref<1x1792xf32, #tpu.memory_space<vmem>>, vector<1x204xf32>
    %c0_4 = arith.constant 0 : index
    %c1024 = arith.constant 1024 : index
    %4 = vector.load %arg5[%c0_4, %c1024] : memref<1x1792xf32, #tpu.memory_space<vmem>>, vector<1x512xf32>
    %c0_5 = arith.constant 0 : index
    %c1536 = arith.constant 1536 : index
    %5 = vector.load %arg5[%c0_5, %c1536] : memref<1x1792xf32, #tpu.memory_space<vmem>>, vector<1x204xf32>
    %c0_6 = arith.constant 0 : index
    %c0_7 = arith.constant 0 : index
    %6 = vector.load %arg6[%c0_6, %c0_7] : memref<640x1xf32, #tpu.memory_space<vmem>>, vector<128x1xf32>
    %c128_8 = arith.constant 128 : index
    %c0_9 = arith.constant 0 : index
    %7 = vector.load %arg6[%c128_8, %c0_9] : memref<640x1xf32, #tpu.memory_space<vmem>>, vector<512x1xf32>
    %c0_10 = arith.constant 0 : index
    %c0_11 = arith.constant 0 : index
    %8 = vector.load %arg3[%c0_10, %c0_11] : memref<128x512xbf16, #tpu.memory_space<vmem>>, vector<128x512xbf16>
    %9 = vector.broadcast %6 : vector<128x1xf32> to vector<128x512xf32>
    %10 = vector.broadcast %4 : vector<1x512xf32> to vector<128x512xf32>
    %11 = arith.mulf %9, %10 : vector<128x512xf32>
    %12 = arith.truncf %11 : vector<128x512xf32> to vector<128x512xbf16>
    %13 = arith.addf %8, %12 : vector<128x512xbf16>
    %c0_12 = arith.constant 0 : index
    %c0_13 = arith.constant 0 : index
    %14 = vector.load %arg4[%c0_12, %c0_13] : memref<512x204xbf16, #tpu.memory_space<vmem>>, vector<512x204xbf16>
    %15 = vector.broadcast %7 : vector<512x1xf32> to vector<512x204xf32>
    %16 = vector.broadcast %5 : vector<1x204xf32> to vector<512x204xf32>
    %17 = arith.mulf %15, %16 : vector<512x204xf32>
    %18 = arith.truncf %17 : vector<512x204xf32> to vector<512x204xbf16>
    %19 = arith.addf %14, %18 : vector<512x204xbf16>
    %c0_14 = arith.constant 0 : index
    %c0_15 = arith.constant 0 : index
    %20 = vector.load %arg0[%c0_14, %c0_15] : memref<8x8xf32, #tpu.memory_space<vmem>>, vector<8x8xf32>
    %c0_16 = arith.constant 0 : index
    %c0_17 = arith.constant 0 : index
    %21 = vector.load %arg1[%c0_16, %c0_17] : memref<8x128xbf16, #tpu.memory_space<vmem>>, vector<8x128xbf16>
    %c0_18 = arith.constant 0 : index
    %c0_19 = arith.constant 0 : index
    %22 = vector.load %arg2[%c0_18, %c0_19] : memref<128x128xbf16, #tpu.memory_space<vmem>>, vector<128x128xbf16>
    %23 = arith.truncf %20 : vector<8x8xf32> to vector<8x8xbf16>
    %cst = arith.constant dense<0.000000e+00> : vector<8x128xf32>
    %24 = tpu.matmul %23, %21, %cst {dimension_numbers = #tpu.dot_dimension_numbers<[1], [0], [0], [1], [0, 0, 1, 1], [], []>} : vector<8x8xbf16>, vector<8x128xbf16>, vector<8x128xf32> -> vector<8x128xf32>
    %25 = vector.broadcast %0 : vector<1x128xf32> to vector<8x128xf32>
    %26 = arith.addf %24, %25 : vector<8x128xf32>
    %cst_20 = arith.constant 0.000000e+00 : f32
    %27 = vector.broadcast %cst_20 : f32 to vector<8x128xf32>
    %28 = arith.maximumf %26, %27 : vector<8x128xf32>
    %29 = arith.truncf %28 : vector<8x128xf32> to vector<8x128xbf16>
    %cst_21 = arith.constant dense<0.000000e+00> : vector<8x128xf32>
    %30 = tpu.matmul %29, %22, %cst_21 {dimension_numbers = #tpu.dot_dimension_numbers<[1], [0], [0], [1], [0, 0, 1, 1], [], []>} : vector<8x128xbf16>, vector<128x128xbf16>, vector<8x128xf32> -> vector<8x128xf32>
    %31 = vector.broadcast %1 : vector<1x128xf32> to vector<8x128xf32>
    %32 = arith.addf %30, %31 : vector<8x128xf32>
    %cst_22 = arith.constant 0.000000e+00 : f32
    %33 = vector.broadcast %cst_22 : f32 to vector<8x128xf32>
    %34 = arith.maximumf %32, %33 : vector<8x128xf32>
    %35 = arith.truncf %34 : vector<8x128xf32> to vector<8x128xbf16>
    %cst_23 = arith.constant dense<0.000000e+00> : vector<8x512xf32>
    %36 = tpu.matmul %35, %13, %cst_23 {dimension_numbers = #tpu.dot_dimension_numbers<[1], [0], [0], [1], [0, 0, 1, 1], [], []>} : vector<8x128xbf16>, vector<128x512xbf16>, vector<8x512xf32> -> vector<8x512xf32>
    %37 = vector.broadcast %2 : vector<1x512xf32> to vector<8x512xf32>
    %38 = arith.addf %36, %37 : vector<8x512xf32>
    %cst_24 = arith.constant 0.000000e+00 : f32
    %39 = vector.broadcast %cst_24 : f32 to vector<8x512xf32>
    %40 = arith.maximumf %38, %39 : vector<8x512xf32>
    %41 = arith.truncf %40 : vector<8x512xf32> to vector<8x512xbf16>
    %cst_25 = arith.constant dense<0.000000e+00> : vector<8x204xf32>
    %42 = tpu.matmul %41, %19, %cst_25 {dimension_numbers = #tpu.dot_dimension_numbers<[1], [0], [0], [1], [0, 0, 1, 1], [], []>} : vector<8x512xbf16>, vector<512x204xbf16>, vector<8x204xf32> -> vector<8x204xf32>
    %43 = vector.broadcast %3 : vector<1x204xf32> to vector<8x204xf32>
    %44 = arith.addf %42, %43 : vector<8x204xf32>
    %45 = tpu.iota {dimensions = array<i32: 1>} : vector<8x204xi32>
    %cst_26 = arith.constant 0.000000e+00 : f32
    %46 = vector.broadcast %cst_26 : f32 to vector<8x204xf32>
    %c0_i32 = arith.constant 0 : i32
    %47 = vector.broadcast %c0_i32 : i32 to vector<8x204xi32>
    %48 = arith.cmpi sge, %45, %47 : vector<8x204xi32>
    %c51_i32 = arith.constant 51 : i32
    %49 = vector.broadcast %c51_i32 : i32 to vector<8x204xi32>
    %50 = arith.cmpi slt, %45, %49 : vector<8x204xi32>
    %51 = arith.andi %48, %50 : vector<8x204xi1>
    %cst_27 = arith.constant -1.000000e+30 : f32
    %52 = vector.broadcast %cst_27 : f32 to vector<8x204xf32>
    %53 = arith.select %51, %44, %52 : vector<8x204xi1>, vector<8x204xf32>
    %cst_28 = arith.constant dense<0xFF800000> : vector<8xf32>
    %54 = vector.multi_reduction <maximumf>, %53, %cst_28 [1] : vector<8x204xf32> to vector<8xf32>
    %55 = vector.shape_cast %54 : vector<8xf32> to vector<8x1xf32>
    %56 = vector.shape_cast %55 : vector<8x1xf32> to vector<8x1xf32>
    %57 = vector.broadcast %56 : vector<8x1xf32> to vector<8x204xf32>
    %58 = arith.select %51, %57, %46 : vector<8x204xi1>, vector<8x204xf32>
    %c51_i32_29 = arith.constant 51 : i32
    %59 = vector.broadcast %c51_i32_29 : i32 to vector<8x204xi32>
    %60 = arith.cmpi sge, %45, %59 : vector<8x204xi32>
    %c102_i32 = arith.constant 102 : i32
    %61 = vector.broadcast %c102_i32 : i32 to vector<8x204xi32>
    %62 = arith.cmpi slt, %45, %61 : vector<8x204xi32>
    %63 = arith.andi %60, %62 : vector<8x204xi1>
    %cst_30 = arith.constant -1.000000e+30 : f32
    %64 = vector.broadcast %cst_30 : f32 to vector<8x204xf32>
    %65 = arith.select %63, %44, %64 : vector<8x204xi1>, vector<8x204xf32>
    %cst_31 = arith.constant dense<0xFF800000> : vector<8xf32>
    %66 = vector.multi_reduction <maximumf>, %65, %cst_31 [1] : vector<8x204xf32> to vector<8xf32>
    %67 = vector.shape_cast %66 : vector<8xf32> to vector<8x1xf32>
    %68 = vector.shape_cast %67 : vector<8x1xf32> to vector<8x1xf32>
    %69 = vector.broadcast %68 : vector<8x1xf32> to vector<8x204xf32>
    %70 = arith.select %63, %69, %58 : vector<8x204xi1>, vector<8x204xf32>
    %c102_i32_32 = arith.constant 102 : i32
    %71 = vector.broadcast %c102_i32_32 : i32 to vector<8x204xi32>
    %72 = arith.cmpi sge, %45, %71 : vector<8x204xi32>
    %c153_i32 = arith.constant 153 : i32
    %73 = vector.broadcast %c153_i32 : i32 to vector<8x204xi32>
    %74 = arith.cmpi slt, %45, %73 : vector<8x204xi32>
    %75 = arith.andi %72, %74 : vector<8x204xi1>
    %cst_33 = arith.constant -1.000000e+30 : f32
    %76 = vector.broadcast %cst_33 : f32 to vector<8x204xf32>
    %77 = arith.select %75, %44, %76 : vector<8x204xi1>, vector<8x204xf32>
    %cst_34 = arith.constant dense<0xFF800000> : vector<8xf32>
    %78 = vector.multi_reduction <maximumf>, %77, %cst_34 [1] : vector<8x204xf32> to vector<8xf32>
    %79 = vector.shape_cast %78 : vector<8xf32> to vector<8x1xf32>
    %80 = vector.shape_cast %79 : vector<8x1xf32> to vector<8x1xf32>
    %81 = vector.broadcast %80 : vector<8x1xf32> to vector<8x204xf32>
    %82 = arith.select %75, %81, %70 : vector<8x204xi1>, vector<8x204xf32>
    %c153_i32_35 = arith.constant 153 : i32
    %83 = vector.broadcast %c153_i32_35 : i32 to vector<8x204xi32>
    %84 = arith.cmpi sge, %45, %83 : vector<8x204xi32>
    %c204_i32 = arith.constant 204 : i32
    %85 = vector.broadcast %c204_i32 : i32 to vector<8x204xi32>
    %86 = arith.cmpi slt, %45, %85 : vector<8x204xi32>
    %87 = arith.andi %84, %86 : vector<8x204xi1>
    %cst_36 = arith.constant -1.000000e+30 : f32
    %88 = vector.broadcast %cst_36 : f32 to vector<8x204xf32>
    %89 = arith.select %87, %44, %88 : vector<8x204xi1>, vector<8x204xf32>
    %cst_37 = arith.constant dense<0xFF800000> : vector<8xf32>
    %90 = vector.multi_reduction <maximumf>, %89, %cst_37 [1] : vector<8x204xf32> to vector<8xf32>
    %91 = vector.shape_cast %90 : vector<8xf32> to vector<8x1xf32>
    %92 = vector.shape_cast %91 : vector<8x1xf32> to vector<8x1xf32>
    %93 = vector.broadcast %92 : vector<8x1xf32> to vector<8x204xf32>
    %94 = arith.select %87, %93, %82 : vector<8x204xi1>, vector<8x204xf32>
    %95 = arith.subf %44, %94 : vector<8x204xf32>
    %96 = math.exp %95 : vector<8x204xf32>
    %cst_38 = arith.constant 1.000000e+00 : f32
    %97 = vector.broadcast %cst_38 : f32 to vector<8x204xf32>
    %cst_39 = arith.constant 0.000000e+00 : f32
    %98 = vector.broadcast %cst_39 : f32 to vector<8x204xf32>
    %99 = arith.select %51, %96, %98 : vector<8x204xi1>, vector<8x204xf32>
    %cst_40 = arith.constant dense<0.000000e+00> : vector<8xf32>
    %100 = vector.multi_reduction <add>, %99, %cst_40 [1] : vector<8x204xf32> to vector<8xf32>
    %101 = vector.shape_cast %100 : vector<8xf32> to vector<8x1xf32>
    %102 = vector.shape_cast %101 : vector<8x1xf32> to vector<8x1xf32>
    %103 = vector.broadcast %102 : vector<8x1xf32> to vector<8x204xf32>
    %104 = arith.select %51, %103, %97 : vector<8x204xi1>, vector<8x204xf32>
    %cst_41 = arith.constant 0.000000e+00 : f32
    %105 = vector.broadcast %cst_41 : f32 to vector<8x204xf32>
    %106 = arith.select %63, %96, %105 : vector<8x204xi1>, vector<8x204xf32>
    %cst_42 = arith.constant dense<0.000000e+00> : vector<8xf32>
    %107 = vector.multi_reduction <add>, %106, %cst_42 [1] : vector<8x204xf32> to vector<8xf32>
    %108 = vector.shape_cast %107 : vector<8xf32> to vector<8x1xf32>
    %109 = vector.shape_cast %108 : vector<8x1xf32> to vector<8x1xf32>
    %110 = vector.broadcast %109 : vector<8x1xf32> to vector<8x204xf32>
    %111 = arith.select %63, %110, %104 : vector<8x204xi1>, vector<8x204xf32>
    %cst_43 = arith.constant 0.000000e+00 : f32
    %112 = vector.broadcast %cst_43 : f32 to vector<8x204xf32>
    %113 = arith.select %75, %96, %112 : vector<8x204xi1>, vector<8x204xf32>
    %cst_44 = arith.constant dense<0.000000e+00> : vector<8xf32>
    %114 = vector.multi_reduction <add>, %113, %cst_44 [1] : vector<8x204xf32> to vector<8xf32>
    %115 = vector.shape_cast %114 : vector<8xf32> to vector<8x1xf32>
    %116 = vector.shape_cast %115 : vector<8x1xf32> to vector<8x1xf32>
    %117 = vector.broadcast %116 : vector<8x1xf32> to vector<8x204xf32>
    %118 = arith.select %75, %117, %111 : vector<8x204xi1>, vector<8x204xf32>
    %cst_45 = arith.constant 0.000000e+00 : f32
    %119 = vector.broadcast %cst_45 : f32 to vector<8x204xf32>
    %120 = arith.select %87, %96, %119 : vector<8x204xi1>, vector<8x204xf32>
    %cst_46 = arith.constant dense<0.000000e+00> : vector<8xf32>
    %121 = vector.multi_reduction <add>, %120, %cst_46 [1] : vector<8x204xf32> to vector<8xf32>
    %122 = vector.shape_cast %121 : vector<8xf32> to vector<8x1xf32>
    %123 = vector.shape_cast %122 : vector<8x1xf32> to vector<8x1xf32>
    %124 = vector.broadcast %123 : vector<8x1xf32> to vector<8x204xf32>
    %125 = arith.select %87, %124, %118 : vector<8x204xi1>, vector<8x204xf32>
    %126 = arith.divf %96, %125 : vector<8x204xf32>
    %c0_47 = arith.constant 0 : index
    %c0_48 = arith.constant 0 : index
    %127 = vector.load %arg7[%c0_47, %c0_48] : memref<8x204xf32, #tpu.memory_space<vmem>>, vector<8x204xf32>
    tpu.vector_store %arg7[%c0_47, %c0_48], %126 {strides = array<i32>} : memref<8x204xf32, #tpu.memory_space<vmem>>, vector<8x204xf32>,
    return
  }
}

</mosaic_0001>

<bundles_post_ra>
// kernel: tpu_custom_call.1
= control target key start
LH: loop header
LB: loop body
LE: loop exit
PB: predicated region body
PF: predicated region fallthrough
CT: control target
= control target key end

     0   :  { %vm1535_vm0 = vcmask 1043456   ;;  %v2866_v2 = vmov 0.0   ;;  %vm2867_vm1 = vmmov 0   ;;  %vm1531_vm2 = vcmask 64512   ;;  %s4491_s0 = inlined_call_operand.vmem [shape: f32[8,8], index: 0, kind: input, shape index: {}]   ;;  %s4492_s1 = inlined_call_operand.vmem [shape: bf16[8,128], index: 1, kind: input, shape index: {}]   ;;  %s4493_s2 = inlined_call_operand.vmem [shape: bf16[128,128], index: 2, kind: input, shape index: {}]   ;;  %s4494_s3 = inlined_call_operand.vmem [shape: bf16[128,512], index: 3, kind: input, shape index: {}]   ;;  %s4495_s4 = inlined_call_operand.vmem [shape: bf16[512,204], index: 4, kind: input, shape index: {}]   ;;  %s4496_s5 = inlined_call_operand.vmem [shape: f32[1,1792], index: 5, kind: input, shape index: {}]   ;;  %s4497_s6 = inlined_call_operand.vmem [shape: f32[640,1], index: 6, kind: input, shape index: {}]   ;;  %s4498_s7 = inlined_call_operand.hbm [shape: f32[8,204], index: 7, kind: output, shape index: {}]  }
   0x1   :  { %v1507_v0 = vld [vmem:[%s4492_s1] sm:$0xf]  ;;  %2789 = vmatprep.subr.bf16.mxu0 %v2866_v2  ;;  %2791 = vmatprep.mubr.msk.bf16.mxu0 %vm2867_vm1, %v2866_v2  ;;  %v36_v5 = vld [vmem:[%s4497_s6 + $0x10] sm:$0xff]  ;;  %v4502_v7 = vmov 0   ;;  %v37_v8 = vld [vmem:[%s4497_s6 + $0x18] sm:$0xff] }
   0x2   :  { %v1506_v1 = vld [vmem:[%s4491_s0] sm:$0xff]  ;;  %v1537_v3 = vsel %vm1535_vm0, %v1507_v0, 0  ;;  %2825 = vset.pattern.permute.xlu1 %v4502_v7  ;;  %2824 = vset.pattern.permute.xlu0 %v4502_v7  ;;  %v35_v9 = vld [vmem:[%s4497_s6 + $0x8] sm:$0xff]  ;;  %v41_v12 = vld [vmem:[%s4497_s6 + $0x38] sm:$0xff] }
   0x3   :  { %v1524_v4 = vpack.c.bf16 %v1506_v1, %v1506_v1  ;;  %v34_v6 = vld [vmem:[%s4497_s6] sm:$0xff]  ;;  %2790 = vmatpush3.bf16.msra.mxu0 %v1537_v3  ;;  %158 = vperm.xlu1 %2825, %v36_v5   ;;  %v39_v10 = vld [vmem:[%s4497_s6 + $0x28] sm:$0xff]  ;;  %v40_v13 = vld [vmem:[%s4497_s6 + $0x30] sm:$0xff] }
   0x4   :  { %148 = vperm.xlu0 %2824, %v34_v6   ;;  %2795 = vmatprep.subr.bf16.mxu1 %v2866_v2  ;;  %v38_v11 = vld [vmem:[%s4497_s6 + $0x20] sm:$0xff]  ;;  %v43_v15 = vld [vmem:[%s4497_s6 + $0x48] sm:$0xff]  ;;  %v45_v18 = vld [vmem:[%s4497_s6 + $0x58] sm:$0xff] }
   0x5   :  { %2811 = vmatprep.mubr.msk.bf16.mxu1 %vm2867_vm1, %v2866_v2  ;;  %v2826_v14 = vld [vmem:[%s4493_s2] sm:$0xff]   ;;  %v2827_v17 = vld [vmem:[%s4493_s2 + $0x8] sm:$0xff]   ;;  %v44_v19 = vld [vmem:[%s4497_s6 + $0x50] sm:$0xff] }
   0x6   :  { %2792 = vmatmul.mubr.msk.bf16.vlgmr.msra.gmra.mrb[0].mxu0 %vm1531_vm2, %v1524_v4  ;;  %v42_v16 = vld [vmem:[%s4497_s6 + $0x40] sm:$0xff]  ;;  %2796 = vmatpush3.bf16.msra.mxu1 %v2826_v14  ;;  %v2828_v20 = vld [vmem:[%s4493_s2 + $0x10] sm:$0xff]   ;;  %v47_v21 = vld [vmem:[%s4497_s6 + $0x68] sm:$0xff] }
   0x7   :  { %1890 = vmatprep.mubr.bf16.mxu0 %v4502_v7  ;;  %163 = vperm.xlu1 %2825, %v37_v8   ;;  %v46_v22 = vld [vmem:[%s4497_s6 + $0x60] sm:$0xff]  ;;  %v2829_v23 = vld [vmem:[%s4493_s2 + $0x18] sm:$0xff]  }
   0x8   :  { %153 = vperm.xlu0 %2824, %v35_v9   ;;  %2797 = vmatprep.subr.bf16.mxu1 %v2866_v2 }
   0xa   :  { %2798 = vmatpush3.bf16.msra.mxu1 %v2827_v17 }
   0xb   :  { %173 = vperm.xlu1 %2825, %v39_v10   ;;  %2799 = vmatprep.subr.bf16.mxu1 %v2866_v2 }
   0xc   :  { %168 = vperm.xlu0 %2824, %v38_v11  }
   0xe   :  { %2800 = vmatpush3.bf16.msra.mxu1 %v2828_v20 }
   0xf   :  { %183 = vperm.xlu1 %2825, %v41_v12   ;;  %2801 = vmatprep.subr.bf16.mxu1 %v2866_v2 }
  0x10   :  { %178 = vperm.xlu0 %2824, %v40_v13  }
  0x13   :  { %193 = vperm.xlu1 %2825, %v43_v15  }
  0x14   :  { %188 = vperm.xlu0 %2824, %v42_v16  }
  0x17   :  { %203 = vperm.xlu1 %2825, %v45_v18  }
  0x18   :  { %198 = vperm.xlu0 %2824, %v44_v19  }
  0x19   :  { %12 = vsyncpa [#allocation3], 0  ;;  %v49_v24 = vld [vmem:[%s4497_s6 + $0x78] sm:$0xff]  ;;  %v48_v25 = vld [vmem:[%s4497_s6 + $0x70] sm:$0xff]  ;;  %2802 = vmatpush3.bf16.msra.mxu1 %v2829_v23  ;;  %v4499_v11 = vlaneseq  ;;  %vm2372_vm3 = vcmask 621568  }
  0x1a   :  { %v2830_v26 = vld [vmem:[%s4493_s2 + $0x20] sm:$0xff]   ;;  %2803 = vmatprep.subr.bf16.mxu1 %v2866_v2  ;;  %v51_v27 = vld [vmem:[%s4497_s6 + $0x88] sm:$0xff]  ;;  %v53_v32 = vld [vmem:[%s4497_s6 + $0x98] sm:$0xff] }
  0x1b   :  { %213 = vperm.xlu1 %2825, %v47_v21   ;;  %v50_v28 = vld [vmem:[%s4497_s6 + $0x80] sm:$0xff]  ;;  %v2831_v29 = vld [vmem:[%s4493_s2 + $0x28] sm:$0xff]   ;;  %v52_v33 = vld [vmem:[%s4497_s6 + $0x90] sm:$0xff]  ;;  %v3144_v14 = vshrl.u32 %v4499_v11, 7 }
  0x1c   :  { %208 = vperm.xlu0 %2824, %v46_v22   ;;  %v83_v30 = vld [vmem:[%s4497_s6 + $0x188] sm:$0xff]  ;;  %v82_v31 = vld [vmem:[%s4497_s6 + $0x180] sm:$0xff]  ;;  %v85_v34 = vld [vmem:[%s4497_s6 + $0x198] sm:$0xff] }
  0x1d   :  { %2804 = vmatpush3.bf16.msra.mxu1 %v2830_v26  ;;  %v84_v35 = vld [vmem:[%s4497_s6 + $0x190] sm:$0xff]  ;;  %v55_v36 = vld [vmem:[%s4497_s6 + $0xa8] sm:$0xff]  ;;  %v54_v37 = vld [vmem:[%s4497_s6 + $0xa0] sm:$0xff]  ;;  %4520 = vst [vmem:[#allocation5_spill] sm:$0xff] %v3144_v14  ;;  %v3153_v17 = vsub.s32 0, %v3144_v14  ;;  %v3156_v18 = vsub.s32 1, %v3144_v14 }
  0x1e   :  { %2805 = vmatprep.subr.bf16.mxu1 %v2866_v2  ;;  %v87_v38 = vld [vmem:[%s4497_s6 + $0x1a8] sm:$0xff]  ;;  %v86_v39 = vld [vmem:[%s4497_s6 + $0x1a0] sm:$0xff]  ;;  %v57_v40 = vld [vmem:[%s4497_s6 + $0xb8] sm:$0xff]  ;;  %v4501_v19 = vsub.s32 2, %v3144_v14  ;;  %v4500_v20 = vsub.s32 3, %v3144_v14 }
  0x1f   :  { %223 = vperm.xlu1 %2825, %v49_v24   ;;  %v56_v41 = vld [vmem:[%s4497_s6 + $0xb0] sm:$0xff]  ;;  %v89_v42 = vld [vmem:[%s4497_s6 + $0x1b8] sm:$0xff]  ;;  %v59_v44 = vld [vmem:[%s4497_s6 + $0xc8] sm:$0xff]  ;;  %4521 = vst [vmem:[#allocation6_spill] sm:$0xff] %v3153_v17 }
  0x20   :  { %218 = vperm.xlu0 %2824, %v48_v25   ;;  %v88_v43 = vld [vmem:[%s4497_s6 + $0x1b0] sm:$0xff]  ;;  %v58_v45 = vld [vmem:[%s4497_s6 + $0xc0] sm:$0xff]  ;;  %v91_v46 = vld [vmem:[%s4497_s6 + $0x1c8] sm:$0xff]  ;;  %4522 = vst [vmem:[#allocation7_spill] sm:$0xff] %v3156_v18 }
  0x21   :  { %2806 = vmatpush3.bf16.msra.mxu1 %v2831_v29  ;;  %v90_v47 = vld [vmem:[%s4497_s6 + $0x1c0] sm:$0xff]  ;;  %v61_v48 = vld [vmem:[%s4497_s6 + $0xd8] sm:$0xff]  ;;  %v60_v49 = vld [vmem:[%s4497_s6 + $0xd0] sm:$0xff] }
  0x22   :  { %2807 = vmatprep.subr.bf16.mxu1 %v2866_v2  ;;  %v93_v50 = vld [vmem:[%s4497_s6 + $0x1d8] sm:$0xff]  ;;  %v92_v51 = vld [vmem:[%s4497_s6 + $0x1d0] sm:$0xff]  ;;  %v63_v52 = vld [vmem:[%s4497_s6 + $0xe8] sm:$0xff] }
  0x23   :  { %606 = vperm.xlu1 %2825, %v51_v27   ;;  %v62_v53 = vld [vmem:[%s4497_s6 + $0xe0] sm:$0xff]  ;;  %v95_v54 = vld [vmem:[%s4497_s6 + $0x1e8] sm:$0xff]  ;;  %v2832_v56 = vld [vmem:[%s4493_s2 + $0x30] sm:$0xff]  }
  0x24   :  { %601 = vperm.xlu0 %2824, %v50_v28   ;;  %v94_v55 = vld [vmem:[%s4497_s6 + $0x1e0] sm:$0xff]  ;;  %v65_v57 = vld [vmem:[%s4497_s6 + $0xf8] sm:$0xff]  ;;  %v64_v58 = vld [vmem:[%s4497_s6 + $0xf0] sm:$0xff] }
  0x25   :  { %2808 = vmatpush3.bf16.msra.mxu1 %v2832_v56  ;;  %v2833_v59 = vld [vmem:[%s4493_s2 + $0x38] sm:$0xff]   ;;  %v96_v61 = vld [vmem:[%s4497_s6 + $0x1f0] sm:$0xff]  ;;  %v67_v62 = vld [vmem:[%s4497_s6 + $0x108] sm:$0xff] }
  0x26   :  { %2809 = vmatprep.subr.bf16.mxu1 %v2866_v2  ;;  %v97_v60 = vld [vmem:[%s4497_s6 + $0x1f8] sm:$0xff]  ;;  %v66_v63 = vld [vmem:[%s4497_s6 + $0x100] sm:$0xff]  ;;  %v99_v0 = vld [vmem:[%s4497_s6 + $0x208] sm:$0xff] }
  0x27   :  { %766 = vperm.xlu1 %2825, %v83_v30   ;;  %v98_v1 = vld [vmem:[%s4497_s6 + $0x200] sm:$0xff]  ;;  %v69_v2 = vld [vmem:[%s4497_s6 + $0x118] sm:$0xff]  ;;  %v68_v3 = vld [vmem:[%s4497_s6 + $0x110] sm:$0xff] }
  0x28   :  { %761 = vperm.xlu0 %2824, %v82_v31   ;;  %v101_v4 = vld [vmem:[%s4497_s6 + $0x218] sm:$0xff]  ;;  %v100_v5 = vld [vmem:[%s4497_s6 + $0x210] sm:$0xff]  ;;  %v71_v6 = vld [vmem:[%s4497_s6 + $0x128] sm:$0xff] }
  0x29   :  { %2810 = vmatpush3.bf16.msra.mxu1 %v2833_v59  ;;  %v70_v8 = vld [vmem:[%s4497_s6 + $0x120] sm:$0xff]  ;;  %v103_v9 = vld [vmem:[%s4497_s6 + $0x228] sm:$0xff]  ;;  %v73_v12 = vld [vmem:[%s4497_s6 + $0x138] sm:$0xff] }
  0x2a   :  { %v102_v10 = vld [vmem:[%s4497_s6 + $0x220] sm:$0xff]  ;;  %v72_v13 = vld [vmem:[%s4497_s6 + $0x130] sm:$0xff]  ;;  %v105_v15 = vld [vmem:[%s4497_s6 + $0x238] sm:$0xff] }
  0x2b   :  { %616 = vperm.xlu1 %2825, %v53_v32   ;;  %v104_v16 = vld [vmem:[%s4497_s6 + $0x230] sm:$0xff]  ;;  %v32_v21 = vld [vmem:[%s4496_s5 + $0x8] sm:$0xf]  ;;  %v74_v27 = vld [vmem:[%s4497_s6 + $0x140] sm:$0xff] }
  0x2c   :  { %611 = vperm.xlu0 %2824, %v52_v33   ;;  %v75_v22 = vld [vmem:[%s4497_s6 + $0x148] sm:$0xff]  ;;  %v3167_v23 = vrot.slane %v32_v21, %v3153_v17  ;;  %v3170_v24 = vrot.slane %v32_v21, %v3156_v18  ;;  %v3174_v25 = vrot.slane %v32_v21, %v4501_v19  ;;  %v3178_v26 = vrot.slane %v32_v21, %v4500_v20 }
  0x2d   :  { %v107_v32 = vld [vmem:[%s4497_s6 + $0x248] sm:$0xff] }
  0x2f   :  { %776 = vperm.xlu1 %2825, %v85_v34  }
  0x30   :  { %771 = vperm.xlu0 %2824, %v84_v35  }
  0x33   :  { %626 = vperm.xlu1 %2825, %v55_v36   ;;  %v106_v36 = vld [vmem:[%s4497_s6 + $0x240] sm:$0xff] }
  0x34   :  { %621 = vperm.xlu0 %2824, %v54_v37  }
  0x37   :  { %786 = vperm.xlu1 %2825, %v87_v38  }
  0x38   :  { %781 = vperm.xlu0 %2824, %v86_v39  }
  0x3b   :  { %636 = vperm.xlu1 %2825, %v57_v40  }
  0x3c   :  { %631 = vperm.xlu0 %2824, %v56_v41  }
  0x3f   :  { %796 = vperm.xlu1 %2825, %v89_v42  }
  0x40   :  { %791 = vperm.xlu0 %2824, %v88_v43  }
  0x43   :  { %646 = vperm.xlu1 %2825, %v59_v44  }
  0x44   :  { %641 = vperm.xlu0 %2824, %v58_v45  }
  0x47   :  { %806 = vperm.xlu1 %2825, %v91_v46  }
  0x48   :  { %801 = vperm.xlu0 %2824, %v90_v47   ;;  %v77_v47 = vld [vmem:[%s4497_s6 + $0x158] sm:$0xff] }
  0x4b   :  { %656 = vperm.xlu1 %2825, %v61_v48  }
  0x4c   :  { %651 = vperm.xlu0 %2824, %v60_v49  }
  0x4f   :  { %816 = vperm.xlu1 %2825, %v93_v50   ;;  %v76_v50 = vld [vmem:[%s4497_s6 + $0x150] sm:$0xff] }
  0x50   :  { %811 = vperm.xlu0 %2824, %v92_v51  }
  0x53   :  { %666 = vperm.xlu1 %2825, %v63_v52  }
  0x54   :  { %661 = vperm.xlu0 %2824, %v62_v53  }
  0x57   :  { %826 = vperm.xlu1 %2825, %v95_v54  }
  0x58   :  { %821 = vperm.xlu0 %2824, %v94_v55  }
  0x5b   :  { %676 = vperm.xlu1 %2825, %v65_v57  }
  0x5c   :  { %671 = vperm.xlu0 %2824, %v64_v58   ;;  %v109_v58 = vld [vmem:[%s4497_s6 + $0x258] sm:$0xff] }
  0x5f   :  { %836 = vperm.xlu1 %2825, %v97_v60  }
  0x60   :  { %831 = vperm.xlu0 %2824, %v96_v61  }
  0x63   :  { %686 = vperm.xlu1 %2825, %v67_v62  }
  0x64   :  { %681 = vperm.xlu0 %2824, %v66_v63   ;;  %v114_v63 = vld [vmem:[%s4494_s3] sm:$0xff] }
  0x67   :  { %846 = vperm.xlu1 %2825, %v99_v0   ;;  %v116_v0 = vld [vmem:[%s4494_s3 + $0x10] sm:$0xff] }
  0x68   :  { %841 = vperm.xlu0 %2824, %v98_v1   ;;  %v115_v1 = vld [vmem:[%s4494_s3 + $0x8] sm:$0xff] }
  0x6b   :  { %696 = vperm.xlu1 %2825, %v69_v2  }
  0x6c   :  { %691 = vperm.xlu0 %2824, %v68_v3  }
  0x6f   :  { %856 = vperm.xlu1 %2825, %v101_v4   ;;  %v108_v4 = vld [vmem:[%s4497_s6 + $0x250] sm:$0xff] }
  0x70   :  { %851 = vperm.xlu0 %2824, %v100_v5  }
  0x73   :  { %706 = vperm.xlu1 %2825, %v71_v6  }
  0x74   :  { %701 = vperm.xlu0 %2824, %v70_v8   ;;  %v117_v8 = vld [vmem:[%s4494_s3 + $0x18] sm:$0xff] }
  0x77   :  { %866 = vperm.xlu1 %2825, %v103_v9  }
  0x78   :  { %861 = vperm.xlu0 %2824, %v102_v10  }
  0x7b   :  { %716 = vperm.xlu1 %2825, %v73_v12  }
  0x7c   :  { %711 = vperm.xlu0 %2824, %v72_v13  }
  0x7f   :  { %876 = vperm.xlu1 %2825, %v105_v15  }
  0x80   :  { %871 = vperm.xlu0 %2824, %v104_v16  }
  0x82   :  { %v159_v28 = vpop.permute.xlu1 %158 }
  0x83   :  { %v3184_v29 = vmul.f32 %v3174_v25, %v159_v28  ;;  %v3187_v30 = vmul.f32 %v3178_v26, %v159_v28  ;;  %v149_v31 = vpop.permute.xlu0 %148  ;;  %726 = vperm.xlu1 %2825, %v75_v22   ;;  %v255_v59 = vmul.f32 %v3167_v23, %v159_v28  ;;  %v256_v60 = vmul.f32 %v3170_v24, %v159_v28 }
  0x84   :  { %721 = vperm.xlu0 %2824, %v74_v27   ;;  %v247_v34 = vmul.f32 %v3167_v23, %v149_v31  ;;  %v248_v35 = vmul.f32 %v3170_v24, %v149_v31  ;;  %v249_v37 = vmul.f32 %v3174_v25, %v149_v31  ;;  %v250_v38 = vmul.f32 %v3178_v26, %v149_v31 }
  0x85   :  { %v2687_v33 = vpack.c.bf16 %v3187_v30, %v3184_v29  ;;  %v122_v29 = vld [vmem:[%s4494_s3 + $0x40] sm:$0xff] }
  0x86   :  { %v164_v39 = vpop.permute.xlu1 %163  ;;  %v2682_v48 = vpack.c.bf16 %v248_v35, %v247_v34  ;;  %v2683_v51 = vpack.c.bf16 %v250_v38, %v249_v37  ;;  %v79_v34 = vld [vmem:[%s4497_s6 + $0x168] sm:$0xff]  ;;  %v2686_v35 = vpack.c.bf16 %v256_v60, %v255_v59  ;;  %v78_v37 = vld [vmem:[%s4497_s6 + $0x160] sm:$0xff] }
  0x87   :  { %v3202_v40 = vmul.f32 %v3174_v25, %v164_v39  ;;  %v3205_v41 = vmul.f32 %v3178_v26, %v164_v39  ;;  %v154_v42 = vpop.permute.xlu0 %153  ;;  %886 = vperm.xlu1 %2825, %v107_v32   ;;  %v259_v2 = vmul.f32 %v3167_v23, %v164_v39  ;;  %v260_v9 = vmul.f32 %v3170_v24, %v164_v39 }
  0x88   :  { %v251_v43 = vmul.f32 %v3167_v23, %v154_v42  ;;  %v252_v44 = vmul.f32 %v3170_v24, %v154_v42  ;;  %v253_v45 = vmul.f32 %v3174_v25, %v154_v42  ;;  %v254_v46 = vmul.f32 %v3178_v26, %v154_v42  ;;  %881 = vperm.xlu0 %2824, %v106_v36  }
  0x89   :  { %v2689_v49 = vpack.c.bf16 %v3205_v41, %v3202_v40  ;;  %v503_v5 = vadd.bf16 %v2682_v48, %v114_v63  ;;  %v3257_v13 = vadd.bf16 %v2683_v51, %v115_v1  ;;  %v2688_v42 = vpack.c.bf16 %v260_v9, %v259_v2  ;;  %v111_v63 = vld [vmem:[%s4497_s6 + $0x268] sm:$0xff]  ;;  %v110_v2 = vld [vmem:[%s4497_s6 + $0x260] sm:$0xff] }
  0x8a   :  { %v2684_v52 = vpack.c.bf16 %v252_v44, %v251_v43  ;;  %v2685_v53 = vpack.c.bf16 %v254_v46, %v253_v45  ;;  %v174_v54 = vpop.permute.xlu1 %173 }
  0x8b   :  { %v3220_v55 = vmul.f32 %v3174_v25, %v174_v54  ;;  %v3223_v56 = vmul.f32 %v3178_v26, %v174_v54  ;;  %v169_v57 = vpop.permute.xlu0 %168  ;;  %736 = vperm.xlu1 %2825, %v77_v47   ;;  %v118_v47 = vld [vmem:[%s4494_s3 + $0x20] sm:$0xff]  ;;  %v3297_v48 = vmul.f32 %v3167_v23, %v174_v54 }
  0x8c   :  { %v3231_v61 = vmul.f32 %v3174_v25, %v169_v57  ;;  %v3234_v62 = vmul.f32 %v3178_v26, %v169_v57  ;;  %731 = vperm.xlu0 %2824, %v76_v50   ;;  %v505_v6 = vadd.bf16 %v2684_v52, %v116_v0  ;;  %v3259_v15 = vadd.bf16 %v2685_v53, %v117_v8 }
  0x8d   :  { %v2693_v3 = vpack.c.bf16 %v3223_v56, %v3220_v55  ;;  %v3268_v27 = vmul.f32 %v3167_v23, %v169_v57  ;;  %v3271_v28 = vmul.f32 %v3170_v24, %v169_v57  ;;  %v3300_v50 = vmul.f32 %v3170_v24, %v174_v54  ;;  %v120_v57 = vld [vmem:[%s4494_s3 + $0x30] sm:$0xff]  ;;  %v129_v56 = vld [vmem:[%s4494_s3 + $0x78] sm:$0xff] }
  0x8e   :  { %v2691_v10 = vpack.c.bf16 %v3234_v62, %v3231_v61  ;;  %v184_v12 = vpop.permute.xlu1 %183  ;;  %v2587_v38 = vcombine.high %v503_v5, %v505_v6  ;;  %v2589_v39 = vcombine.high %v3257_v13, %v3259_v15  ;;  %v2586_v45 = vcombine.low %v503_v5, %v505_v6 }
  0x8f   :  { %v3262_v16 = vmul.f32 %v3174_v25, %v184_v12  ;;  %v3265_v21 = vmul.f32 %v3178_v26, %v184_v12  ;;  %v179_v22 = vpop.permute.xlu0 %178  ;;  %896 = vperm.xlu1 %2825, %v109_v58   ;;  %v2690_v58 = vpack.c.bf16 %v3271_v28, %v3268_v27  ;;  %v3314_v59 = vmul.f32 %v3167_v23, %v184_v12  ;;  %v119_v27 = vld [vmem:[%s4494_s3 + $0x28] sm:$0xff]  ;;  %v121_v28 = vld [vmem:[%s4494_s3 + $0x38] sm:$0xff] }
  0x90   :  { %v3274_v31 = vmul.f32 %v3174_v25, %v179_v22  ;;  %v3277_v32 = vmul.f32 %v3178_v26, %v179_v22  ;;  %891 = vperm.xlu0 %2824, %v108_v4   ;;  %v3326_v0 = vmul.f32 %v3170_v24, %v184_v12  ;;  %1858 = vmatprep.subr.bf16.mxu0 %v2587_v38 }
  0x91   :  { %1899 = vmatprep.subr.bf16.mxu1 %v2589_v39  ;;  %v507_v4 = vadd.bf16 %v2686_v35, %v118_v47  ;;  %v3334_v5 = vmul.f32 %v3167_v23, %v179_v22  ;;  %v3337_v6 = vmul.f32 %v3170_v24, %v179_v22  ;;  %1859 = vmatpush1.bf16.msra.mxu0 %v2586_v45  ;;  %v81_v47 = vld [vmem:[%s4497_s6 + $0x178] sm:$0xff] }
  0x92   :  { %v194_v44 = vpop.permute.xlu1 %193  ;;  %v509_v12 = vadd.bf16 %v2688_v42, %v120_v57  ;;  %v3382_v11 = vadd.bf16 %v2687_v33, %v119_v27  ;;  %v2692_v20 = vpack.c.bf16 %v3300_v50, %v3297_v48  ;;  %v2696_v19 = vpack.c.bf16 %v3326_v0, %v3314_v59  ;;  %v124_v48 = vld [vmem:[%s4494_s3 + $0x50] sm:$0xff]  ;;  %v123_v27 = vld [vmem:[%s4494_s3 + $0x48] sm:$0xff] }
  0x93   :  { %v3303_v51 = vmul.f32 %v3174_v25, %v194_v44  ;;  %v3306_v52 = vmul.f32 %v3178_v26, %v194_v44  ;;  %v189_v53 = vpop.permute.xlu0 %188  ;;  %746 = vperm.xlu1 %2825, %v79_v34   ;;  %v3348_v34 = vmul.f32 %v3167_v23, %v194_v44  ;;  %v3351_v22 = vmul.f32 %v3170_v24, %v194_v44 }
  0x94   :  { %v3317_v54 = vmul.f32 %v3174_v25, %v189_v53  ;;  %v3320_v60 = vmul.f32 %v3178_v26, %v189_v53  ;;  %741 = vperm.xlu0 %2824, %v78_v37   ;;  %v3360_v39 = vmul.f32 %v3167_v23, %v189_v53  ;;  %v3363_v42 = vmul.f32 %v3170_v24, %v189_v53 }
  0x95   :  { %v2591_v53 = vcombine.high %v507_v4, %v509_v12  ;;  %v2590_v57 = vcombine.low %v507_v4, %v509_v12  ;;  %v2694_v30 = vpack.c.bf16 %v3337_v6, %v3334_v5  ;;  %v113_v12 = vld [vmem:[%s4497_s6 + $0x278] sm:$0xff]  ;;  %v513_v33 = vadd.bf16 %v2692_v20, %v124_v48  ;;  %v126_v20 = vld [vmem:[%s4494_s3 + $0x60] sm:$0xff] }
  0x96   :  { %v204_v9 = vpop.permute.xlu1 %203  ;;  %v2698_v50 = vpack.c.bf16 %v3363_v42, %v3360_v39  ;;  %v112_v39 = vld [vmem:[%s4497_s6 + $0x270] sm:$0xff] }
  0x97   :  { %v3354_v35 = vmul.f32 %v3174_v25, %v204_v9  ;;  %v3357_v37 = vmul.f32 %v3178_v26, %v204_v9  ;;  %v199_v38 = vpop.permute.xlu0 %198  ;;  %906 = vperm.xlu1 %2825, %v111_v63   ;;  %v80_v63 = vld [vmem:[%s4497_s6 + $0x170] sm:$0xff]  ;;  %v3414_v4 = vmul.f32 %v3167_v23, %v204_v9  ;;  %1860 = vmatprep.subr.bf16.mxu0 %v2591_v53  ;;  %v125_v53 = vld [vmem:[%s4494_s3 + $0x58] sm:$0xff] }
  0x98   :  { %v3366_v45 = vmul.f32 %v3174_v25, %v199_v38  ;;  %v3369_v44 = vmul.f32 %v3178_v26, %v199_v38  ;;  %901 = vperm.xlu0 %2824, %v110_v2   ;;  %v3387_v2 = vadd.bf16 %v2689_v49, %v121_v28  ;;  %v3438_v7 = vmul.f32 %v3170_v24, %v204_v9 }
  0x99   :  { %v3441_v1 = vmul.f32 %v3167_v23, %v199_v38  ;;  %1861 = vmatpush1.bf16.msra.mxu0 %v2590_v57  ;;  %v3449_v42 = vmul.f32 %v3170_v24, %v199_v38  ;;  %v3460_v57 = vadd.bf16 %v2691_v10, %v123_v27  ;;  %v33_v38 = vld [vmem:[%s4496_s5 + $0xc] sm:$0x3]  ;;  %v3488_v28 = vadd.bf16 %v2693_v3, %v125_v53  ;;  %v130_v3 = vld [vmem:[%s4494_s3 + $0x80] sm:$0xff] }
  0x9a   :  { %v214_v46 = vpop.permute.xlu1 %213  ;;  %v515_v55 = vadd.bf16 %v2694_v30, %v126_v20  ;;  %v3513_v53 = vrot.slane %v33_v38, %v3153_v17  ;;  %v2704_v20 = vpack.c.bf16 %v3438_v7, %v3414_v4  ;;  %v4524_v7 = vpack.c.bf16 %v3265_v21, %v3262_v16 }
  0x9b   :  { %v3403_v40 = vmul.f32 %v3174_v25, %v214_v46  ;;  %v3406_v41 = vmul.f32 %v3178_v26, %v214_v46  ;;  %v209_v49 = vpop.permute.xlu0 %208  ;;  %756 = vperm.xlu1 %2825, %v81_v47   ;;  %v3469_v48 = vmul.f32 %v3167_v23, %v214_v46  ;;  %v3472_v47 = vmul.f32 %v3170_v24, %v214_v46 }
  0x9c   :  { %v3417_v5 = vmul.f32 %v3174_v25, %v209_v49  ;;  %v3420_v6 = vmul.f32 %v3178_v26, %v209_v49  ;;  %751 = vperm.xlu0 %2824, %v80_v63   ;;  %v511_v63 = vadd.bf16 %v2690_v58, %v122_v29  ;;  %v3481_v62 = vmul.f32 %v3167_v23, %v209_v49 }
  0x9d   :  { %v3497_v46 = vmul.f32 %v3170_v24, %v209_v49  ;;  %v132_v49 = vld [vmem:[%s4494_s3 + $0x90] sm:$0xff]  ;;  %v2597_v30 = vcombine.high %v3460_v57, %v3488_v28  ;;  %v519_v4 = vadd.bf16 %v2698_v50, %v130_v3 }
  0x9e   :  { %v224_v8 = vpop.permute.xlu1 %223  ;;  %v2595_v27 = vcombine.high %v511_v63, %v513_v33  ;;  %v2594_v36 = vcombine.low %v511_v63, %v513_v33  ;;  %v3522_v63 = vrot.slane %v33_v38, %v3156_v18  ;;  %v131_v33 = vld [vmem:[%s4494_s3 + $0x88] sm:$0xff]  ;;  %v2702_v38 = vpack.c.bf16 %v3449_v42, %v3441_v1  ;;  %v133_v1 = vld [vmem:[%s4494_s3 + $0x98] sm:$0xff] }
  0x9f   :  { %v3452_v58 = vmul.f32 %v3174_v25, %v224_v8  ;;  %v3455_v9 = vmul.f32 %v3178_v26, %v224_v8  ;;  %v219_v29 = vpop.permute.xlu0 %218  ;;  %916 = vperm.xlu1 %2825, %v113_v12   ;;  %v307_v16 = vmul.f32 %v3167_v23, %v224_v8  ;;  %v308_v21 = vmul.f32 %v3170_v24, %v224_v8 }
  0xa0   :  { %v3475_v12 = vmul.f32 %v3174_v25, %v219_v29  ;;  %v3478_v61 = vmul.f32 %v3178_v26, %v219_v29  ;;  %911 = vperm.xlu0 %2824, %v112_v39   ;;  %v128_v25 = vld [vmem:[%s4494_s3 + $0x70] sm:$0xff]  ;;  %v127_v26 = vld [vmem:[%s4494_s3 + $0x68] sm:$0xff]  ;;  %1862 = vmatprep.subr.bf16.mxu0 %v2595_v27  ;;  %v4523_v27 = vpack.c.bf16 %v3277_v32, %v3274_v31 }
  0xa1   :  { %1863 = vmatpush1.bf16.msra.mxu0 %v2594_v36  ;;  %v517_v43 = vadd.bf16 %v2696_v19, %v128_v25  ;;  %v3542_v36 = vadd.bf16 %v4524_v7, %v129_v56  ;;  %v4525_v19 = vpack.c.bf16 %v3351_v22, %v3348_v34  ;;  %v2708_v31 = vpack.c.bf16 %v3472_v47, %v3469_v48  ;;  %v136_v47 = vld [vmem:[%s4494_s3 + $0xb0] sm:$0xff] }
  0xa2   :  { %v3501_v10 = vpop.permute.xlu1 %606  ;;  %v3532_v14 = vadd.bf16 %v4523_v27, %v127_v26  ;;  %v2706_v32 = vpack.c.bf16 %v3497_v46, %v3481_v62  ;;  %v4526_v22 = vpack.c.bf16 %v3320_v60, %v3317_v54  ;;  %v303_v48 = vmul.f32 %v3167_v23, %v219_v29  ;;  %v135_v60 = vld [vmem:[%s4494_s3 + $0xa8] sm:$0xff]  ;;  %v137_v27 = vld [vmem:[%s4494_s3 + $0xb8] sm:$0xff] }
  0xa3   :  { %v3515_v39 = vpop.permute.xlu0 %601  ;;  %v521_v59 = vadd.bf16 %v4525_v19, %v132_v49  ;;  %v2599_v0 = vcombine.high %v515_v55, %v517_v43  ;;  %v2598_v25 = vcombine.low %v515_v55, %v517_v43  ;;  %v134_v43 = vld [vmem:[%s4494_s3 + $0xa0] sm:$0xff]  ;;  %v304_v8 = vmul.f32 %v3170_v24, %v219_v29 }
  0xa4   :  { %v2601_v34 = vcombine.high %v3532_v14, %v3542_v36  ;;  %v3561_v42 = vadd.bf16 %v4526_v22, %v131_v33  ;;  %v2600_v54 = vcombine.low %v3532_v14, %v3542_v36  ;;  %v4527_v23 = vpack.c.bf16 %v3306_v52, %v3303_v51 }
  0xa5   :  { %1864 = vmatprep.subr.bf16.mxu0 %v2599_v0  ;;  %v2603_v55 = vcombine.high %v519_v4, %v521_v59  ;;  %v2602_v24 = vcombine.low %v519_v4, %v521_v59  ;;  %v523_v49 = vadd.bf16 %v2702_v38, %v134_v43  ;;  %v525_v33 = vadd.bf16 %v2704_v20, %v136_v47  ;;  %v138_v4 = vld [vmem:[%s4494_s3 + $0xc0] sm:$0xff]  ;;  %v140_v20 = vld [vmem:[%s4494_s3 + $0xd0] sm:$0xff]  ;;  %v139_v59 = vld [vmem:[%s4494_s3 + $0xc8] sm:$0xff] }
  0xa6   :  { %v767_v50 = vpop.permute.xlu1 %766  ;;  %1865 = vmatpush1.bf16.msra.mxu0 %v2598_v25  ;;  %v3581_v56 = vadd.bf16 %v4527_v23, %v133_v1  ;;  %v4528_v51 = vpack.c.bf16 %v3369_v44, %v3366_v45  ;;  %v2712_v38 = vpack.c.bf16 %v308_v21, %v307_v16  ;;  %v2710_v0 = vpack.c.bf16 %v304_v8, %v303_v48  ;;  %v568_v16 = vld [vmem:[%s4495_s4 + $0x108] sm:$0xff]  ;;  %v141_v47 = vld [vmem:[%s4494_s3 + $0xd8] sm:$0xff]  ;;  %v567_v48 = vld [vmem:[%s4495_s4 + $0x100] sm:$0xff] }
  0xa7   :  { %v996_v62 = vmul.f32 %v3513_v53, %v767_v50  ;;  %v997_v26 = vmul.f32 %v3522_v63, %v767_v50  ;;  %v762_v46 = vpop.permute.xlu0 %761  ;;  %1866 = vmatprep.subr.bf16.mxu0 %v2603_v55  ;;  %v2607_v45 = vcombine.high %v523_v49, %v525_v33  ;;  %v4529_v44 = vpack.c.bf16 %v3357_v37, %v3354_v35 }
  0xa8   :  { %v994_v29 = vmul.f32 %v3513_v53, %v762_v46  ;;  %v995_v3 = vmul.f32 %v3522_v63, %v762_v46  ;;  %v2605_v7 = vcombine.high %v3561_v42, %v3581_v56  ;;  %v3593_v52 = vadd.bf16 %v4528_v51, %v135_v60  ;;  %v143_v60 = vld [vmem:[%s4494_s3 + $0xe8] sm:$0xff] }
  0xa9   :  { %v2604_v19 = vcombine.low %v3561_v42, %v3581_v56  ;;  %v3609_v25 = vadd.bf16 %v4529_v44, %v137_v27  ;;  %v2606_v1 = vcombine.low %v523_v49, %v525_v33  ;;  %v2747_v21 = vpack.c.bf16 %v997_v26, %v996_v62 }
  0xaa   :  { %1867 = vmatpush1.bf16.msra.mxu0 %v2602_v24  ;;  %v2746_v50 = vpack.c.bf16 %v995_v3, %v994_v29  ;;  %v527_v22 = vadd.bf16 %v2706_v32, %v138_v4  ;;  %v529_v43 = vadd.bf16 %v2708_v31, %v140_v20  ;;  %v4530_v37 = vpack.c.bf16 %v3420_v6, %v3417_v5  ;;  %v142_v31 = vld [vmem:[%s4494_s3 + $0xe0] sm:$0xff]  ;;  %v144_v32 = vld [vmem:[%s4494_s3 + $0xf0] sm:$0xff]  ;;  %v145_v3 = vld [vmem:[%s4494_s3 + $0xf8] sm:$0xff] }
  0xab   :  { %1868 = vmatprep.subr.bf16.mxu0 %v2607_v45  ;;  %v2609_v35 = vcombine.high %v3593_v52, %v3609_v25  ;;  %v2608_v62 = vcombine.low %v3593_v52, %v3609_v25  ;;  %v4531_v5 = vpack.c.bf16 %v3406_v41, %v3403_v40  ;;  %v3639_v55 = vadd.bf16 %v2747_v21, %v568_v16  ;;  %v612_v42 = vpop.permute.xlu0 %611 }
  0xac   :  { %v528_v8 = vadd.bf16 %v4530_v37, %v139_v59  ;;  %v2611_v26 = vcombine.high %v527_v22, %v529_v43  ;;  %v2610_v46 = vcombine.low %v527_v22, %v529_v43  ;;  %v3641_v23 = vadd.bf16 %v2746_v50, %v567_v48 }
  0xad   :  { %v530_v6 = vadd.bf16 %v4531_v5, %v141_v47  ;;  %v531_v24 = vadd.bf16 %v2710_v0, %v142_v31  ;;  %v533_v29 = vadd.bf16 %v2712_v38, %v144_v32  ;;  %v4532_v33 = vpack.c.bf16 %v3478_v61, %v3475_v12  ;;  %v2575_v12 = vld [vmem:[%s4496_s5] ss:$0 sm:$0xff] }
  0xae   :  { %1869 = vmatpush1.bf16.msra.mxu0 %v2606_v1  ;;  %v4533_v41 = vpack.c.bf16 %v3455_v9, %v3452_v58  ;;  %v2651_v20 = vcombine.high %v3641_v23, %v3639_v55  ;;  %v4534_v1 = vcombine.low %v3257_v13, %v3259_v15  ;;  %v4535_v16 = vmov 0  }
  0xaf   :  { %1870 = vmatprep.subr.bf16.mxu0 %v2611_v26  ;;  %v2613_v49 = vcombine.high %v528_v8, %v530_v6  ;;  %v532_v27 = vadd.bf16 %v4532_v33, %v143_v60  ;;  %v2612_v51 = vcombine.low %v528_v8, %v530_v6  ;;  %v2615_v40 = vcombine.high %v531_v24, %v533_v29  ;;  %v772_v56 = vpop.permute.xlu0 %771 }
  0xb0   :  { %v534_v52 = vadd.bf16 %v4533_v41, %v145_v3  ;;  %v2614_v4 = vcombine.low %v531_v24, %v533_v29  ;;  %v4536_v21 = vcombine.high %v3382_v11, %v3387_v2  ;;  %v4537_v50 = vcombine.low %v3382_v11, %v3387_v2 }
  0xb1   :  { %v4538_v22 = vcombine.low %v3460_v57, %v3488_v28  ;;  %v932_v11 = vmul.f32 %v3513_v53, %v3501_v10  ;;  %v933_v13 = vmul.f32 %v3522_v63, %v3501_v10  ;;  %v930_v15 = vmul.f32 %v3513_v53, %v3515_v39  ;;  %v536_v57 = vld [vmem:[%s4495_s4 + $0x8] sm:$0xff]  ;;  %v535_v10 = vld [vmem:[%s4495_s4] sm:$0xff] }
  0xb2   :  { %1871 = vmatpush1.bf16.msra.mxu0 %v2610_v46  ;;  %v2617_v38 = vcombine.high %v532_v27, %v534_v52  ;;  %v2616_v59 = vcombine.low %v532_v27, %v534_v52  ;;  %v931_v2 = vmul.f32 %v3522_v63, %v3515_v39 }
  0xb3   :  { %1872 = vmatprep.subr.bf16.mxu0 %v2615_v40  ;;  %v2715_v14 = vpack.c.bf16 %v933_v13, %v932_v11 }
  0xb4   :  { %v2714_v28 = vpack.c.bf16 %v931_v2, %v930_v15  ;;  %v538_v15 = vld [vmem:[%s4495_s4 + $0x18] sm:$0xff] }
  0xb5   :  { %v3699_v39 = vadd.bf16 %v2715_v14, %v536_v57 }
  0xb6   :  { %1873 = vmatpush1.bf16.msra.mxu0 %v2614_v4 }
  0xb7   :  { %2320 = vmatprep.subr.bf16.mxu0 %v2651_v20 }
  0xd9   :  { %v1573_v61 = vpop.f32.mrb[0].mxu0 }
  0xda   :  { %v1574_v0 = vadd.f32 %v2575_v12, %v1573_v61  ;;  %v2793_v45 = vpop.f32.mrb[1].mxu0 }
  0xdb   :  { %v1576_v44 = vpop.f32.mrb[2].mxu0  ;;  %v935_v45 = vmul.f32 %v3522_v63, %v612_v42 }
  0xdc   :  { %v1579_v25 = vmax.f32 %v1574_v0, 0.0  ;;  %v2794_v58 = vpop.f32.mrb[3].mxu0  ;;  %v934_v0 = vmul.f32 %v3513_v53, %v612_v42 }
  0xde   :  { %v1580_v9 = vpack.c.bf16 %v1579_v25, %v1579_v25 }
  0xe0   :  { %2812 = vmatmul.mubr.bf16.vlgmr.msra.gmra.mrb[0].mxu1 %v1580_v9 }
  0xe1   :  { %1900 = vmatpush1.bf16.msra.mxu1 %v4534_v1  ;;  %1931 = vmatprep.mubr.bf16.mxu1 %v4535_v16  ;;  %v2716_v16 = vpack.c.bf16 %v935_v45, %v934_v0 }
  0xe2   :  { %1901 = vmatprep.subr.bf16.mxu1 %v4536_v21  ;;  %v998_v21 = vmul.f32 %v3513_v53, %v772_v56 }
  0xe5   :  { %1902 = vmatpush1.bf16.msra.mxu1 %v4537_v50 }
  0xe6   :  { %1903 = vmatprep.subr.bf16.mxu1 %v2597_v30  ;;  %v3701_v30 = vadd.bf16 %v2714_v28, %v535_v10  ;;  %v537_v10 = vld [vmem:[%s4495_s4 + $0x10] sm:$0xff] }
  0xe8   :  { %v2619_v36 = vcombine.high %v3701_v30, %v3699_v39 }
  0xe9   :  { %1904 = vmatpush1.bf16.msra.mxu1 %v4538_v22  ;;  %v999_v22 = vmul.f32 %v3522_v63, %v772_v56 }
  0xea   :  { %1905 = vmatprep.subr.bf16.mxu1 %v2601_v34  ;;  %v617_v34 = vpop.permute.xlu1 %616 }
  0xeb   :  { %v936_v12 = vmul.f32 %v3513_v53, %v617_v34  ;;  %v937_v61 = vmul.f32 %v3522_v63, %v617_v34 }
  0xed   :  { %1906 = vmatpush1.bf16.msra.mxu1 %v2600_v54  ;;  %v2717_v1 = vpack.c.bf16 %v937_v61, %v936_v12 }
  0xee   :  { %1907 = vmatprep.subr.bf16.mxu1 %v2605_v7  ;;  %v777_v54 = vpop.permute.xlu1 %776 }
  0xef   :  { %v1000_v44 = vmul.f32 %v3513_v53, %v777_v54  ;;  %v1001_v25 = vmul.f32 %v3522_v63, %v777_v54  ;;  %v3788_v0 = vadd.bf16 %v2717_v1, %v538_v15  ;;  %v540_v1 = vld [vmem:[%s4495_s4 + $0x28] sm:$0xff] }
  0xf1   :  { %1908 = vmatpush1.bf16.msra.mxu1 %v2604_v19  ;;  %v622_v19 = vpop.permute.xlu0 %621  ;;  %v2749_v50 = vpack.c.bf16 %v1001_v25, %v1000_v44  ;;  %v3792_v44 = vadd.bf16 %v2716_v16, %v537_v10  ;;  %v2748_v25 = vpack.c.bf16 %v999_v22, %v998_v21  ;;  %v539_v16 = vld [vmem:[%s4495_s4 + $0x20] sm:$0xff]  ;;  %v541_v10 = vld [vmem:[%s4495_s4 + $0x30] sm:$0xff] }
  0xf2   :  { %1909 = vmatprep.subr.bf16.mxu1 %v2609_v35  ;;  %v627_v7 = vpop.permute.xlu1 %626  ;;  %v938_v2 = vmul.f32 %v3513_v53, %v622_v19  ;;  %v939_v14 = vmul.f32 %v3522_v63, %v622_v19 }
  0xf3   :  { %v940_v11 = vmul.f32 %v3513_v53, %v627_v7  ;;  %v941_v13 = vmul.f32 %v3522_v63, %v627_v7 }
  0xf4   :  { %v2718_v18 = vpack.c.bf16 %v939_v14, %v938_v2  ;;  %v542_v2 = vld [vmem:[%s4495_s4 + $0x38] sm:$0xff] }
  0xf5   :  { %1910 = vmatpush1.bf16.msra.mxu1 %v2608_v62  ;;  %v782_v47 = vpop.permute.xlu0 %781 }
  0xf6   :  { %1911 = vmatprep.subr.bf16.mxu1 %v2613_v49  ;;  %v787_v43 = vpop.permute.xlu1 %786  ;;  %v1002_v34 = vmul.f32 %v3513_v53, %v782_v47  ;;  %v1003_v42 = vmul.f32 %v3522_v63, %v782_v47 }
  0xf7   :  { %v1004_v28 = vmul.f32 %v3513_v53, %v787_v43  ;;  %v1005_v57 = vmul.f32 %v3522_v63, %v787_v43 }
  0xf9   :  { %1912 = vmatpush1.bf16.msra.mxu1 %v2612_v51  ;;  %v632_v35 = vpop.permute.xlu0 %631  ;;  %v2751_v17 = vpack.c.bf16 %v1005_v57, %v1004_v28 }
  0xfa   :  { %1913 = vmatprep.subr.bf16.mxu1 %v2617_v38  ;;  %v637_v48 = vpop.permute.xlu1 %636  ;;  %v942_v7 = vmul.f32 %v3513_v53, %v632_v35  ;;  %v943_v19 = vmul.f32 %v3522_v63, %v632_v35 }
  0xfb   :  { %v944_v54 = vmul.f32 %v3513_v53, %v637_v48  ;;  %v945_v56 = vmul.f32 %v3522_v63, %v637_v48  ;;  %v2719_v48 = vpack.c.bf16 %v941_v13, %v940_v11  ;;  %v572_v11 = vld [vmem:[%s4495_s4 + $0x128] sm:$0xff]  ;;  %v571_v13 = vld [vmem:[%s4495_s4 + $0x120] sm:$0xff] }
  0xfd   :  { %1914 = vmatpush1.bf16.msra.mxu1 %v2616_v59  ;;  %v3705_v8 = vpop.permute.xlu0 %791  ;;  %v2721_v35 = vpack.c.bf16 %v945_v56, %v944_v54 }
  0xfe   :  { %2279 = vmatprep.subr.bf16.mxu1 %v2619_v36  ;;  %v797_v37 = vpop.permute.xlu1 %796  ;;  %v570_v36 = vld [vmem:[%s4495_s4 + $0x118] sm:$0xff]  ;;  %v1006_v21 = vmul.f32 %v3513_v53, %v3705_v8  ;;  %v1007_v22 = vmul.f32 %v3522_v63, %v3705_v8 }
  0xff   :  { %v1008_v43 = vmul.f32 %v3513_v53, %v797_v37  ;;  %v1009_v12 = vmul.f32 %v3522_v63, %v797_v37  ;;  %v3794_v47 = vadd.bf16 %v2749_v50, %v570_v36  ;;  %v569_v37 = vld [vmem:[%s4495_s4 + $0x110] sm:$0xff]  ;;  %v2720_v50 = vpack.c.bf16 %v943_v19, %v942_v7  ;;  %v574_v36 = vld [vmem:[%s4495_s4 + $0x138] sm:$0xff] }
 0x100   :  { %v3842_v56 = vadd.bf16 %v2748_v25, %v569_v37  ;;  %v3844_v7 = vadd.bf16 %v2719_v48, %v540_v1  ;;  %v2752_v37 = vpack.c.bf16 %v1007_v22, %v1006_v21 }
 0x101   :  { %v3709_v32 = vpop.permute.xlu0 %641  ;;  %v2753_v15 = vpack.c.bf16 %v1009_v12, %v1008_v43  ;;  %v3860_v25 = vadd.bf16 %v2720_v50, %v541_v10  ;;  %v544_v50 = vld [vmem:[%s4495_s4 + $0x48] sm:$0xff] }
 0x102   :  { %v3707_v31 = vpop.permute.xlu1 %646  ;;  %v946_v8 = vmul.f32 %v3513_v53, %v3709_v32  ;;  %v947_v57 = vmul.f32 %v3522_v63, %v3709_v32  ;;  %4544 = vst [vmem:[#allocation13_spill] sm:$0xff] %v3844_v7 }
 0x103   :  { %v948_v14 = vmul.f32 %v3513_v53, %v3707_v31  ;;  %v949_v28 = vmul.f32 %v3522_v63, %v3707_v31  ;;  %v3862_v48 = vadd.bf16 %v2753_v15, %v574_v36 }
 0x105   :  { %v3713_v60 = vpop.permute.xlu0 %801  ;;  %v2723_v1 = vpack.c.bf16 %v949_v28, %v948_v14 }
 0x106   :  { %v3711_v62 = vpop.permute.xlu1 %806  ;;  %v1011_v32 = vmul.f32 %v3522_v63, %v3713_v60 }
 0x107   :  { %v1013_v31 = vmul.f32 %v3522_v63, %v3711_v62 }
 0x109   :  { %v3717_v5 = vpop.permute.xlu0 %651 }
 0x10a   :  { %v3715_v26 = vpop.permute.xlu1 %656 }
 0x10b   :  { %v952_v19 = vmul.f32 %v3513_v53, %v3715_v26  ;;  %v953_v43 = vmul.f32 %v3522_v63, %v3715_v26  ;;  %v3866_v26 = vmul.f32 %v3513_v53, %v3717_v5 }
 0x10d   :  { %v3721_v46 = vpop.permute.xlu0 %811 }
 0x10e   :  { %v3719_v6 = vpop.permute.xlu1 %816  ;;  %v1014_v15 = vmul.f32 %v3513_v53, %v3721_v46 }
 0x111   :  { %v3725_v29 = vpop.permute.xlu0 %661 }
 0x112   :  { %v3723_v24 = vpop.permute.xlu1 %666 }
 0x113   :  { %v956_v21 = vmul.f32 %v3513_v53, %v3723_v24 }
 0x115   :  { %v3729_v49 = vpop.permute.xlu0 %821 }
 0x116   :  { %v3727_v3 = vpop.permute.xlu1 %826  ;;  %v1018_v10 = vmul.f32 %v3513_v53, %v3729_v49  ;;  %v1019_v36 = vmul.f32 %v3522_v63, %v3729_v49 }
 0x117   :  { %v1020_v14 = vmul.f32 %v3513_v53, %v3727_v3  ;;  %v1021_v28 = vmul.f32 %v3522_v63, %v3727_v3  ;;  %v3922_v3 = vadd.bf16 %v2723_v1, %v544_v50  ;;  %v547_v50 = vld [vmem:[%s4495_s4 + $0x60] sm:$0xff] }
 0x119   :  { %v3733_v27 = vpop.permute.xlu0 %671 }
 0x11a   :  { %v3731_v33 = vpop.permute.xlu1 %676 }
 0x11d   :  { %v3737_v40 = vpop.permute.xlu0 %831 }
 0x11e   :  { %v3735_v51 = vpop.permute.xlu1 %836 }
 0x121   :  { %v3741_v52 = vpop.permute.xlu0 %681 }
 0x122   :  { %v3739_v41 = vpop.permute.xlu1 %686 }
 0x125   :  { %v3745_v20 = vpop.permute.xlu0 %841 }
 0x126   :  { %v3743_v4 = vpop.permute.xlu1 %846 }
 0x129   :  { %v3749_v59 = vpop.permute.xlu0 %691 }
 0x12a   :  { %v3747_v38 = vpop.permute.xlu1 %696 }
 0x12d   :  { %v3759_v9 = vpop.permute.xlu0 %851 }
 0x12e   :  { %v3757_v58 = vpop.permute.xlu1 %856  ;;  %4540 = vst [vmem:[#allocation9_spill] sm:$0xff] %v3759_v9  ;;  %v2750_v9 = vpack.c.bf16 %v1003_v42, %v1002_v34  ;;  %v1012_v34 = vmul.f32 %v3513_v53, %v3711_v62  ;;  %v1010_v42 = vmul.f32 %v3513_v53, %v3713_v60  ;;  %v3852_v62 = vadd.bf16 %v2718_v18, %v539_v16  ;;  %v573_v16 = vld [vmem:[%s4495_s4 + $0x130] sm:$0xff] }
 0x12f   :  { %4539 = vst [vmem:[#allocation8_spill] sm:$0xff] %v3757_v58  ;;  %v3858_v60 = vadd.bf16 %v2721_v35, %v542_v2  ;;  %v2725_v18 = vpack.c.bf16 %v953_v43, %v952_v19  ;;  %v1017_v35 = vmul.f32 %v3522_v63, %v3719_v6  ;;  %v954_v2 = vmul.f32 %v3513_v53, %v3725_v29 }
 0x130   :  { %v2755_v7 = vpack.c.bf16 %v1013_v31, %v1012_v34  ;;  %v2754_v58 = vpack.c.bf16 %v1011_v32, %v1010_v42  ;;  %v961_v34 = vmul.f32 %v3522_v63, %v3731_v33  ;;  %v3920_v31 = vadd.bf16 %v2752_v37, %v573_v16  ;;  %v2577_v16 = vld [vmem:[%s4496_s5 + $0x1] ss:$0 sm:$0xff] }
 0x131   :  { %v3790_v45 = vpop.permute.xlu0 %701  ;;  %v958_v42 = vmul.f32 %v3513_v53, %v3733_v27  ;;  %v959_v32 = vmul.f32 %v3522_v63, %v3733_v27  ;;  %v545_v27 = vld [vmem:[%s4495_s4 + $0x50] sm:$0xff] }
 0x132   :  { %v3786_v61 = vpop.permute.xlu1 %706  ;;  %4542 = vst [vmem:[#allocation11_spill] sm:$0xff] %v3790_v45  ;;  %v3854_v45 = vadd.bf16 %v2751_v17, %v572_v11  ;;  %v951_v17 = vmul.f32 %v3522_v63, %v3717_v5  ;;  %v1015_v5 = vmul.f32 %v3522_v63, %v3721_v46  ;;  %v543_v11 = vld [vmem:[%s4495_s4 + $0x40] sm:$0xff] }
 0x133   :  { %4541 = vst [vmem:[#allocation10_spill] sm:$0xff] %v3786_v61  ;;  %v3856_v61 = vadd.bf16 %v2750_v9, %v571_v13  ;;  %v1016_v9 = vmul.f32 %v3513_v53, %v3719_v6  ;;  %v957_v6 = vmul.f32 %v3522_v63, %v3723_v24  ;;  %v576_v13 = vld [vmem:[%s4495_s4 + $0x148] sm:$0xff]  ;;  %v575_v46 = vld [vmem:[%s4495_s4 + $0x140] sm:$0xff]  ;;  %v955_v24 = vmul.f32 %v3522_v63, %v3725_v29 }
 0x134   :  { %v960_v29 = vmul.f32 %v3513_v53, %v3731_v33  ;;  %v3930_v43 = vadd.bf16 %v2755_v7, %v576_v13  ;;  %v3932_v49 = vadd.bf16 %v2754_v58, %v575_v46  ;;  %v2756_v37 = vpack.c.bf16 %v1015_v5, %v1014_v15  ;;  %v578_v58 = vld [vmem:[%s4495_s4 + $0x158] sm:$0xff]  ;;  %v580_v15 = vld [vmem:[%s4495_s4 + $0x168] sm:$0xff] }
 0x135   :  { %v3850_v12 = vpop.permute.xlu0 %861  ;;  %v2757_v33 = vpack.c.bf16 %v1017_v35, %v1016_v9  ;;  %v2727_v1 = vpack.c.bf16 %v957_v6, %v956_v21  ;;  %v2726_v7 = vpack.c.bf16 %v955_v24, %v954_v2  ;;  %v548_v35 = vld [vmem:[%s4495_s4 + $0x68] sm:$0xff]  ;;  %v2728_v5 = vpack.c.bf16 %v959_v32, %v958_v42  ;;  %v579_v2 = vld [vmem:[%s4495_s4 + $0x160] sm:$0xff]  ;;  %v550_v24 = vld [vmem:[%s4495_s4 + $0x78] sm:$0xff] }
 0x136   :  { %v3840_v54 = vpop.permute.xlu1 %866  ;;  %v1024_v21 = vmul.f32 %v3513_v53, %v3735_v51  ;;  %v1025_v6 = vmul.f32 %v3522_v63, %v3735_v51  ;;  %v1023_v51 = vmul.f32 %v3522_v63, %v3737_v40  ;;  %v962_v42 = vmul.f32 %v3513_v53, %v3741_v52 }
 0x137   :  { %4543 = vst [vmem:[#allocation12_spill] sm:$0xff] %v3840_v54  ;;  %v2722_v54 = vpack.c.bf16 %v947_v57, %v946_v8  ;;  %v546_v57 = vld [vmem:[%s4495_s4 + $0x58] sm:$0xff]  ;;  %v963_v32 = vmul.f32 %v3522_v63, %v3741_v52 }
 0x139   :  { %v3907_v8 = vpop.permute.xlu0 %711  ;;  %v3928_v19 = vadd.bf16 %v2722_v54, %v543_v11  ;;  %v577_v54 = vld [vmem:[%s4495_s4 + $0x150] sm:$0xff]  ;;  %v1022_v11 = vmul.f32 %v3513_v53, %v3737_v40 }
 0x13a   :  { %v3888_v22 = vpop.permute.xlu1 %716  ;;  %4546 = vst [vmem:[#allocation15_spill] sm:$0xff] %v3907_v8  ;;  %v2724_v8 = vpack.c.bf16 %v951_v17, %v3866_v26  ;;  %v2759_v26 = vpack.c.bf16 %v1021_v28, %v1020_v14  ;;  %v2729_v17 = vpack.c.bf16 %v961_v34, %v960_v29  ;;  %v549_v14 = vld [vmem:[%s4495_s4 + $0x70] sm:$0xff]  ;;  %v964_v28 = vmul.f32 %v3513_v53, %v3739_v41 }
 0x13b   :  { %4545 = vst [vmem:[#allocation14_spill] sm:$0xff] %v3888_v22  ;;  %v3935_v22 = vadd.bf16 %v2725_v18, %v546_v57  ;;  %v2758_v18 = vpack.c.bf16 %v1019_v36, %v1018_v10  ;;  %v965_v57 = vmul.f32 %v3522_v63, %v3739_v41  ;;  %v3985_v34 = vadd.bf16 %v2757_v33, %v578_v58 }
 0x13c   :  { %v3983_v29 = vadd.bf16 %v2724_v8, %v545_v27  ;;  %v3991_v40 = vadd.bf16 %v2756_v37, %v577_v54  ;;  %v4001_v33 = vadd.bf16 %v2729_v17, %v550_v24  ;;  %v4003_v27 = vadd.bf16 %v2728_v5, %v549_v14  ;;  %v582_v17 = vld [vmem:[%s4495_s4 + $0x178] sm:$0xff]  ;;  %v551_v5 = vld [vmem:[%s4495_s4 + $0x80] sm:$0xff] }
 0x13d   :  { %4547 = vst [vmem:[#allocation16_spill] sm:$0xff] %v3935_v22  ;;  %v3966_v13 = vpop.permute.xlu0 %871  ;;  %v3995_v22 = vadd.bf16 %v2726_v7, %v547_v50  ;;  %v3999_v8 = vadd.bf16 %v2758_v18, %v579_v2  ;;  %v2761_v58 = vpack.c.bf16 %v1025_v6, %v1024_v21  ;;  %v2731_v52 = vpack.c.bf16 %v965_v57, %v964_v28 }
 0x13e   :  { %v3949_v9 = vpop.permute.xlu1 %876  ;;  %4549 = vst [vmem:[#allocation18_spill] sm:$0xff] %v3966_v13  ;;  %v1028_v54 = vmul.f32 %v3513_v53, %v3743_v4  ;;  %v2650_v18 = vcombine.low %v3641_v23, %v3639_v55  ;;  %v1029_v50 = vmul.f32 %v3522_v63, %v3743_v4  ;;  %v1026_v55 = vmul.f32 %v3513_v53, %v3745_v20  ;;  %v552_v4 = vld [vmem:[%s4495_s4 + $0x88] sm:$0xff] }
 0x13f   :  { %4548 = vst [vmem:[#allocation17_spill] sm:$0xff] %v3949_v9  ;;  %v3993_v9 = vadd.bf16 %v2727_v1, %v548_v35  ;;  %v2730_v1 = vpack.c.bf16 %v963_v32, %v962_v42  ;;  %v581_v35 = vld [vmem:[%s4495_s4 + $0x170] sm:$0xff]  ;;  %v1027_v23 = vmul.f32 %v3522_v63, %v3745_v20  ;;  %v969_v21 = vmul.f32 %v3522_v63, %v3747_v38 }
 0x140   :  { %v966_v6 = vmul.f32 %v3513_v53, %v3749_v59  ;;  %v967_v20 = vmul.f32 %v3522_v63, %v3749_v59  ;;  %v2620_v24 = vcombine.low %v3792_v44, %v3788_v0  ;;  %v2652_v14 = vcombine.low %v3842_v56, %v3794_v47  ;;  %v4551_v59 = vld [vmem:[#allocation13_spill] sm:$0xff] }
 0x141   :  { %v4009_v7 = vpop.permute.xlu0 %721  ;;  %v2655_v42 = vcombine.high %v3856_v61, %v3854_v45  ;;  %v4063_v32 = vadd.bf16 %v2731_v52, %v552_v4  ;;  %v586_v4 = vld [vmem:[%s4495_s4 + $0x198] sm:$0xff] }
 0x1b3   :  { %v1669_v46 = vpop.f32.mrb[0].mxu1 }
 0x1b4   :  { %v1670_v10 = vadd.f32 %v2577_v16, %v1669_v46  ;;  %v2813_v36 = vpop.f32.mrb[1].mxu1  ;;  %v3997_v46 = vadd.bf16 %v2759_v26, %v580_v15  ;;  %v2618_v26 = vcombine.low %v3701_v30, %v3699_v39  ;;  %v2621_v15 = vcombine.high %v3792_v44, %v3788_v0 }
 0x1b5   :  { %v1672_v13 = vpop.f32.mrb[2].mxu1  ;;  %v2760_v36 = vpack.c.bf16 %v1023_v51, %v1022_v11  ;;  %v2653_v39 = vcombine.high %v3842_v56, %v3794_v47  ;;  %v968_v30 = vmul.f32 %v3513_v53, %v3747_v38  ;;  %v4045_v11 = vadd.bf16 %v2761_v58, %v582_v17  ;;  %v4550_v51 = vld [vmem:[#allocation8_spill] sm:$0xff]  ;;  %v4067_v47 = vpop.permute.xlu0 %881 }
 0x1b6   :  { %v1675_v41 = vmax.f32 %v1670_v10, 0.0  ;;  %v2814_v16 = vpop.f32.mrb[3].mxu1  ;;  %v4005_v13 = vpop.permute.xlu1 %726  ;;  %v1032_v38 = vmul.f32 %v3513_v53, %v4550_v51  ;;  %v1033_v28 = vmul.f32 %v3522_v63, %v4550_v51  ;;  %v2623_v10 = vcombine.high %v3852_v62, %v4551_v59  ;;  %v584_v58 = vld [vmem:[%s4495_s4 + $0x188] sm:$0xff] }
 0x1b7   :  { %v4047_v2 = vadd.bf16 %v2760_v36, %v581_v35  ;;  %v4065_v0 = vadd.bf16 %v2730_v1, %v551_v5  ;;  %v2763_v44 = vpack.c.bf16 %v1029_v50, %v1028_v54  ;;  %v2762_v56 = vpack.c.bf16 %v1027_v23, %v1026_v55  ;;  %v4552_v36 = vld [vmem:[#allocation9_spill] sm:$0xff]  ;;  %v4553_v35 = vld [vmem:[#allocation10_spill] sm:$0xff]  ;;  %v4555_v5 = vld [vmem:[#allocation12_spill] sm:$0xff] }
 0x1b8   :  { %v1676_v37 = vpack.c.bf16 %v1675_v41, %v1675_v41  ;;  %v2733_v41 = vpack.c.bf16 %v969_v21, %v968_v30  ;;  %v2732_v16 = vpack.c.bf16 %v967_v20, %v966_v6  ;;  %v1030_v52 = vmul.f32 %v3513_v53, %v4552_v36 }
 0x1b9   :  { %v2622_v1 = vcombine.low %v3852_v62, %v4551_v59  ;;  %v2654_v54 = vcombine.low %v3856_v61, %v3854_v45  ;;  %v2765_v17 = vpack.c.bf16 %v1033_v28, %v1032_v38  ;;  %v972_v50 = vmul.f32 %v3513_v53, %v4553_v35  ;;  %v553_v61 = vld [vmem:[%s4495_s4 + $0x90] sm:$0xff]  ;;  %v4116_v51 = vpop.permute.xlu0 %731 }
 0x1ba   :  { %1891 = vmatmul.mubr.bf16.vlgmr.msra.gmra.mrb[4].mxu0 %v1676_v37  ;;  %1932 = vmatmul.mubr.bf16.vlgmr.msra.gmra.mrb[4].mxu1 %v1676_v37  ;;  %v4057_v57 = vpop.permute.xlu1 %886  ;;  %v1031_v37 = vmul.f32 %v3522_v63, %v4552_v36  ;;  %v2657_v62 = vcombine.high %v3920_v31, %v3862_v48  ;;  %v973_v45 = vmul.f32 %v3522_v63, %v4553_v35  ;;  %v555_v36 = vld [vmem:[%s4495_s4 + $0xa0] sm:$0xff] }
 0x1bb   :  { %2280 = vmatpush1.bf16.msra.mxu1 %v2618_v26  ;;  %2321 = vmatpush1.bf16.msra.mxu0 %v2650_v18  ;;  %v583_v26 = vld [vmem:[%s4495_s4 + $0x180] sm:$0xff]  ;;  %v554_v18 = vld [vmem:[%s4495_s4 + $0x98] sm:$0xff]  ;;  %v4101_v30 = vadd.bf16 %v2763_v44, %v584_v58  ;;  %v1036_v21 = vmul.f32 %v3513_v53, %v4555_v5  ;;  %v1037_v6 = vmul.f32 %v3522_v63, %v4555_v5 }
 0x1bc   :  { %2281 = vmatprep.subr.bf16.mxu1 %v2621_v15  ;;  %2322 = vmatprep.subr.bf16.mxu0 %v2653_v39  ;;  %v2625_v15 = vcombine.high %v3860_v25, %v3858_v60  ;;  %v4554_v39 = vld [vmem:[#allocation11_spill] sm:$0xff]  ;;  %v2624_v38 = vcombine.low %v3860_v25, %v3858_v60  ;;  %v2656_v28 = vcombine.low %v3920_v31, %v3862_v48  ;;  %v585_v60 = vld [vmem:[%s4495_s4 + $0x190] sm:$0xff] }
 0x1bd   :  { %v970_v55 = vmul.f32 %v3513_v53, %v4554_v39  ;;  %v971_v23 = vmul.f32 %v3522_v63, %v4554_v39  ;;  %v4122_v59 = vadd.bf16 %v2732_v16, %v553_v61  ;;  %v2659_v44 = vcombine.high %v3932_v49, %v3930_v43  ;;  %v556_v16 = vld [vmem:[%s4495_s4 + $0xa8] sm:$0xff] }
 0x1be   :  { %v4110_v20 = vpop.permute.xlu1 %736  ;;  %v2767_v25 = vpack.c.bf16 %v1037_v6, %v1036_v21  ;;  %v1034_v48 = vmul.f32 %v3513_v53, %v3850_v12  ;;  %v1035_v31 = vmul.f32 %v3522_v63, %v3850_v12  ;;  %v2658_v12 = vcombine.low %v3932_v49, %v3930_v43  ;;  %v4559_v43 = vld [vmem:[#allocation17_spill] sm:$0xff] }
 0x1bf   :  { %2282 = vmatpush1.bf16.msra.mxu1 %v2620_v24  ;;  %2323 = vmatpush1.bf16.msra.mxu0 %v2652_v14  ;;  %v4112_v24 = vadd.bf16 %v2762_v56, %v583_v26  ;;  %v4114_v14 = vadd.bf16 %v2733_v41, %v554_v18  ;;  %v4128_v56 = vadd.bf16 %v2765_v17, %v586_v4  ;;  %v588_v26 = vld [vmem:[%s4495_s4 + $0x1a8] sm:$0xff]  ;;  %v4557_v18 = vld [vmem:[#allocation15_spill] sm:$0xff] }
 0x1c0   :  { %2283 = vmatprep.subr.bf16.mxu1 %v2623_v10  ;;  %2324 = vmatprep.subr.bf16.mxu0 %v2655_v42  ;;  %v2764_v10 = vpack.c.bf16 %v1031_v37, %v1030_v52  ;;  %v2627_v42 = vcombine.high %v3928_v19, %v3922_v3  ;;  %v2735_v41 = vpack.c.bf16 %v973_v45, %v972_v50  ;;  %v4556_v52 = vld [vmem:[#allocation14_spill] sm:$0xff]  ;;  %v4170_v45 = vpop.permute.xlu0 %891 }
 0x1c1   :  { %v2734_v58 = vpack.c.bf16 %v971_v23, %v970_v55  ;;  %v976_v37 = vmul.f32 %v3513_v53, %v4556_v52  ;;  %v974_v17 = vmul.f32 %v3513_v53, %v4557_v18  ;;  %v975_v35 = vmul.f32 %v3522_v63, %v4557_v18 }
 0x1c2   :  { %v4158_v50 = vpop.permute.xlu1 %896  ;;  %v1040_v49 = vmul.f32 %v3513_v53, %v4559_v43  ;;  %v1041_v61 = vmul.f32 %v3522_v63, %v4559_v43  ;;  %v4172_v39 = vadd.bf16 %v2735_v41, %v556_v16  ;;  %v2766_v23 = vpack.c.bf16 %v1035_v31, %v1034_v48  ;;  %v587_v41 = vld [vmem:[%s4495_s4 + $0x1a0] sm:$0xff]  ;;  %v589_v43 = vld [vmem:[%s4495_s4 + $0x1b0] sm:$0xff] }
 0x1c3   :  { %2284 = vmatpush1.bf16.msra.mxu1 %v2622_v1  ;;  %2325 = vmatpush1.bf16.msra.mxu0 %v2654_v54  ;;  %v977_v1 = vmul.f32 %v3522_v63, %v4556_v52  ;;  %v2626_v54 = vcombine.low %v3928_v19, %v3922_v3  ;;  %v2661_v3 = vcombine.high %v3991_v40, %v3985_v34 }
 0x1c4   :  { %2285 = vmatprep.subr.bf16.mxu1 %v2625_v15  ;;  %2326 = vmatprep.subr.bf16.mxu0 %v2657_v62  ;;  %v4558_v15 = vld [vmem:[#allocation16_spill] sm:$0xff]  ;;  %v4164_v19 = vadd.bf16 %v2764_v10, %v585_v60  ;;  %v4174_v55 = vadd.bf16 %v2734_v58, %v555_v36  ;;  %v4176_v4 = vadd.bf16 %v2767_v25, %v588_v26  ;;  %v557_v60 = vld [vmem:[%s4495_s4 + $0xb0] sm:$0xff]  ;;  %v590_v25 = vld [vmem:[%s4495_s4 + $0x1b8] sm:$0xff] }
 0x1c5   :  { %v2629_v62 = vcombine.high %v3983_v29, %v4558_v15  ;;  %v2737_v5 = vpack.c.bf16 %v977_v1, %v976_v37  ;;  %v2628_v21 = vcombine.low %v3983_v29, %v4558_v15  ;;  %v2660_v6 = vcombine.low %v3991_v40, %v3985_v34  ;;  %v558_v29 = vld [vmem:[%s4495_s4 + $0xb8] sm:$0xff]  ;;  %v4216_v1 = vpop.permute.xlu0 %741 }
 0x1c6   :  { %v2769_v58 = vpack.c.bf16 %v1041_v61, %v1040_v49  ;;  %v980_v40 = vmul.f32 %v3513_v53, %v4005_v13  ;;  %v981_v48 = vmul.f32 %v3522_v63, %v4005_v13  ;;  %v978_v31 = vmul.f32 %v3513_v53, %v4009_v7  ;;  %v4210_v36 = vpop.permute.xlu1 %746  ;;  %v560_v49 = vld [vmem:[%s4495_s4 + $0xc8] sm:$0xff] }
 0x1c7   :  { %2286 = vmatpush1.bf16.msra.mxu1 %v2624_v38  ;;  %2327 = vmatpush1.bf16.msra.mxu0 %v2656_v28  ;;  %v2736_v38 = vpack.c.bf16 %v975_v35, %v974_v17  ;;  %v4560_v28 = vld [vmem:[#allocation18_spill] sm:$0xff]  ;;  %v979_v16 = vmul.f32 %v3522_v63, %v4009_v7  ;;  %v1044_v52 = vmul.f32 %v3513_v53, %v4057_v57 }
 0x1c8   :  { %2287 = vmatprep.subr.bf16.mxu1 %v2627_v42  ;;  %2328 = vmatprep.subr.bf16.mxu0 %v2659_v44  ;;  %v1038_v10 = vmul.f32 %v3513_v53, %v4560_v28  ;;  %v2631_v42 = vcombine.high %v3995_v22, %v3993_v9  ;;  %v2663_v44 = vcombine.high %v3999_v8, %v3997_v46 }
 0x1c9   :  { %v1039_v34 = vmul.f32 %v3522_v63, %v4560_v28  ;;  %v1045_v37 = vmul.f32 %v3522_v63, %v4057_v57  ;;  %v2630_v13 = vcombine.low %v3995_v22, %v3993_v9  ;;  %v4224_v7 = vadd.bf16 %v2737_v5, %v558_v29 }
 0x1ca   :  { %v2633_v26 = vcombine.high %v4003_v27, %v4001_v33  ;;  %v2665_v18 = vcombine.high %v4047_v2, %v4045_v11  ;;  %v4230_v17 = vadd.bf16 %v2736_v38, %v557_v60  ;;  %v4232_v57 = vadd.bf16 %v2769_v58, %v590_v25  ;;  %v591_v25 = vld [vmem:[%s4495_s4 + $0x1c0] sm:$0xff] }
 0x1cb   :  { %2288 = vmatpush1.bf16.msra.mxu1 %v2626_v54  ;;  %2329 = vmatpush1.bf16.msra.mxu0 %v2658_v12  ;;  %v2662_v54 = vcombine.low %v3999_v8, %v3997_v46  ;;  %v4222_v12 = vadd.bf16 %v2766_v23, %v587_v41  ;;  %v2768_v35 = vpack.c.bf16 %v1039_v34, %v1038_v10  ;;  %v907_v23 = vpop.permute.xlu1 %906 }
 0x1cc   :  { %2289 = vmatprep.subr.bf16.mxu1 %v2629_v62  ;;  %2330 = vmatprep.subr.bf16.mxu0 %v2661_v3  ;;  %v2739_v22 = vpack.c.bf16 %v981_v48, %v980_v40  ;;  %v2738_v9 = vpack.c.bf16 %v979_v16, %v978_v31  ;;  %v4236_v46 = vmul.f32 %v3513_v53, %v4067_v47  ;;  %v562_v48 = vld [vmem:[%s4495_s4 + $0xd8] sm:$0xff]  ;;  %v561_v31 = vld [vmem:[%s4495_s4 + $0xd0] sm:$0xff] }
 0x1cd   :  { %v2771_v8 = vpack.c.bf16 %v1045_v37, %v1044_v52  ;;  %v1043_v15 = vmul.f32 %v3522_v63, %v4067_v47  ;;  %v2632_v62 = vcombine.low %v4003_v27, %v4001_v33  ;;  %v2664_v3 = vcombine.low %v4047_v2, %v4045_v11  ;;  %v559_v11 = vld [vmem:[%s4495_s4 + $0xc0] sm:$0xff] }
 0x1ce   :  { %v984_v61 = vmul.f32 %v3513_v53, %v4110_v20  ;;  %v985_v47 = vmul.f32 %v3522_v63, %v4110_v20  ;;  %v2635_v33 = vcombine.high %v4065_v0, %v4063_v32  ;;  %v2667_v27 = vcombine.high %v4112_v24, %v4101_v30 }
 0x1cf   :  { %2290 = vmatpush1.bf16.msra.mxu1 %v2628_v21  ;;  %2331 = vmatpush1.bf16.msra.mxu0 %v2660_v6  ;;  %v982_v2 = vmul.f32 %v3513_v53, %v4116_v51  ;;  %v983_v5 = vmul.f32 %v3522_v63, %v4116_v51  ;;  %v1048_v20 = vmul.f32 %v3513_v53, %v4158_v50  ;;  %v902_v21 = vpop.permute.xlu0 %901  ;;  %v592_v6 = vld [vmem:[%s4495_s4 + $0x1c8] sm:$0xff] }
 0x1d0   :  { %2291 = vmatprep.subr.bf16.mxu1 %v2631_v42  ;;  %2332 = vmatprep.subr.bf16.mxu0 %v2663_v44  ;;  %v1049_v38 = vmul.f32 %v3522_v63, %v4158_v50  ;;  %v1046_v28 = vmul.f32 %v3513_v53, %v4170_v45  ;;  %v1047_v10 = vmul.f32 %v3522_v63, %v4170_v45 }
 0x1d1   :  { %v4276_v51 = vadd.bf16 %v2768_v35, %v589_v43  ;;  %v4278_v42 = vadd.bf16 %v2739_v22, %v560_v49  ;;  %v2634_v44 = vcombine.low %v4065_v0, %v4063_v32  ;;  %v2666_v41 = vcombine.low %v4112_v24, %v4101_v30  ;;  %v757_v24 = vpop.permute.xlu1 %756 }
 0x1d2   :  { %v4284_v29 = vadd.bf16 %v2738_v9, %v559_v11  ;;  %v2770_v50 = vpack.c.bf16 %v1043_v15, %v4236_v46  ;;  %v2637_v58 = vcombine.high %v4122_v59, %v4114_v14  ;;  %v2669_v45 = vcombine.high %v4164_v19, %v4128_v56 }
 0x1d3   :  { %2292 = vmatpush1.bf16.msra.mxu1 %v2630_v13  ;;  %2333 = vmatpush1.bf16.msra.mxu0 %v2662_v54  ;;  %v4291_v34 = vadd.bf16 %v2771_v8, %v592_v6  ;;  %v2741_v40 = vpack.c.bf16 %v985_v47, %v984_v61  ;;  %v2740_v60 = vpack.c.bf16 %v983_v5, %v982_v2  ;;  %v752_v37 = vpop.permute.xlu0 %751  ;;  %v563_v5 = vld [vmem:[%s4495_s4 + $0xe0] sm:$0xff] }
 0x1d4   :  { %2293 = vmatprep.subr.bf16.mxu1 %v2633_v26  ;;  %2334 = vmatprep.subr.bf16.mxu0 %v2665_v18  ;;  %v2773_v32 = vpack.c.bf16 %v1049_v38, %v1048_v20  ;;  %v2772_v0 = vpack.c.bf16 %v1047_v10, %v1046_v28  ;;  %v988_v30 = vmul.f32 %v3513_v53, %v4210_v36  ;;  %v594_v26 = vld [vmem:[%s4495_s4 + $0x1d8] sm:$0xff]  ;;  %v593_v18 = vld [vmem:[%s4495_s4 + $0x1d0] sm:$0xff]  ;;  %v596_v20 = vld [vmem:[%s4495_s4 + $0x1e8] sm:$0xff] }
 0x1d5   :  { %v989_v16 = vmul.f32 %v3522_v63, %v4210_v36  ;;  %v986_v52 = vmul.f32 %v3513_v53, %v4216_v1  ;;  %v2636_v13 = vcombine.low %v4122_v59, %v4114_v14  ;;  %v2668_v54 = vcombine.low %v4164_v19, %v4128_v56  ;;  %v917_v61 = vpop.permute.xlu1 %916 }
 0x1d6   :  { %v987_v36 = vmul.f32 %v3522_v63, %v4216_v1  ;;  %v1052_v35 = vmul.f32 %v3513_v53, %v907_v23  ;;  %v2639_v22 = vcombine.high %v4174_v55, %v4172_v39  ;;  %v2671_v14 = vcombine.high %v4222_v12, %v4176_v4 }
 0x1d7   :  { %2294 = vmatpush1.bf16.msra.mxu1 %v2632_v62  ;;  %2335 = vmatpush1.bf16.msra.mxu0 %v2664_v3  ;;  %v1053_v59 = vmul.f32 %v3522_v63, %v907_v23  ;;  %v1050_v56 = vmul.f32 %v3513_v53, %v902_v21  ;;  %v1051_v19 = vmul.f32 %v3522_v63, %v902_v21  ;;  %v912_v2 = vpop.permute.xlu0 %911  ;;  %v595_v21 = vld [vmem:[%s4495_s4 + $0x1e0] sm:$0xff] }
 0x1d8   :  { %2295 = vmatprep.subr.bf16.mxu1 %v2635_v33  ;;  %2336 = vmatprep.subr.bf16.mxu0 %v2667_v27  ;;  %v1498_v9 = vadd.bf16 %v2770_v50, %v591_v25  ;;  %v4328_v46 = vadd.bf16 %v2741_v40, %v562_v48  ;;  %v4330_v1 = vadd.bf16 %v2740_v60, %v561_v31 }
 0x1d9   :  { %v4332_v8 = vadd.bf16 %v2773_v32, %v594_v26  ;;  %v4334_v15 = vadd.bf16 %v2772_v0, %v593_v18  ;;  %v2638_v62 = vcombine.low %v4174_v55, %v4172_v39  ;;  %v2670_v3 = vcombine.low %v4222_v12, %v4176_v4  ;;  %v564_v39 = vld [vmem:[%s4495_s4 + $0xe8] sm:$0xff] }
 0x1da   :  { %v2743_v43 = vpack.c.bf16 %v989_v16, %v988_v30  ;;  %v2742_v49 = vpack.c.bf16 %v987_v36, %v986_v52  ;;  %v2641_v47 = vcombine.high %v4230_v17, %v4224_v7  ;;  %v2673_v23 = vcombine.high %v4276_v51, %v4232_v57 }
 0x1db   :  { %2296 = vmatpush1.bf16.msra.mxu1 %v2634_v44  ;;  %2337 = vmatpush1.bf16.msra.mxu0 %v2666_v41  ;;  %v2775_v33 = vpack.c.bf16 %v1053_v59, %v1052_v35  ;;  %v2774_v27 = vpack.c.bf16 %v1051_v19, %v1050_v56  ;;  %v992_v11 = vmul.f32 %v3513_v53, %v757_v24  ;;  %v30_v59 = vld [vmem:[%s4496_s5 + $0x2] sm:$0xf]  ;;  %v4561_v56 = vld [vmem:[#allocation6_spill] sm:$0xff] }
 0x1dc   :  { %2297 = vmatprep.subr.bf16.mxu1 %v2637_v58  ;;  %2338 = vmatprep.subr.bf16.mxu0 %v2669_v45  ;;  %v993_v55 = vmul.f32 %v3522_v63, %v757_v24  ;;  %v990_v4 = vmul.f32 %v3513_v53, %v752_v37  ;;  %v991_v12 = vmul.f32 %v3522_v63, %v752_v37 }
 0x1dd   :  { %v1056_v6 = vmul.f32 %v3513_v53, %v917_v61  ;;  %v1057_v38 = vmul.f32 %v3522_v63, %v917_v61  ;;  %v2640_v28 = vcombine.low %v4230_v17, %v4224_v7  ;;  %v2672_v10 = vcombine.low %v4276_v51, %v4232_v57  ;;  %v566_v57 = vld [vmem:[%s4495_s4 + $0xf8] sm:$0xff]  ;;  %v565_v51 = vld [vmem:[%s4495_s4 + $0xf0] sm:$0xff] }
 0x1de   :  { %v1054_v44 = vmul.f32 %v3513_v53, %v912_v2  ;;  %v1055_v41 = vmul.f32 %v3522_v63, %v912_v2  ;;  %v2643_v50 = vcombine.high %v4284_v29, %v4278_v42  ;;  %v2675_v58 = vcombine.high %v1498_v9, %v4291_v34 }
 0x1df   :  { %2298 = vmatpush1.bf16.msra.mxu1 %v2636_v13  ;;  %2339 = vmatpush1.bf16.msra.mxu0 %v2668_v54  ;;  %v1471_v45 = vadd.bf16 %v2743_v43, %v564_v39  ;;  %v1470_v40 = vadd.bf16 %v2742_v49, %v563_v5  ;;  %v1503_v60 = vadd.bf16 %v2775_v33, %v596_v20 }
 0x1e0   :  { %2299 = vmatprep.subr.bf16.mxu1 %v2639_v22  ;;  %2340 = vmatprep.subr.bf16.mxu0 %v2671_v14  ;;  %v1502_v32 = vadd.bf16 %v2774_v27, %v595_v21  ;;  %v2745_v7 = vpack.c.bf16 %v993_v55, %v992_v11  ;;  %v2744_v17 = vpack.c.bf16 %v991_v12, %v990_v4 }
 0x1e1   :  { %v2642_v53 = vcombine.low %v4284_v29, %v4278_v42  ;;  %v2674_v63 = vcombine.low %v1498_v9, %v4291_v34  ;;  %v2777_v0 = vpack.c.bf16 %v1057_v38, %v1056_v6  ;;  %v2776_v30 = vpack.c.bf16 %v1055_v41, %v1054_v44  ;;  %v598_v42 = vld [vmem:[%s4495_s4 + $0x1f8] sm:$0xff]  ;;  %v597_v29 = vld [vmem:[%s4495_s4 + $0x1f0] sm:$0xff]  ;;  %v31_v44 = vld [vmem:[%s4496_s5 + $0x6] sm:$0x3]  ;;  %s2870_s5 = smov [#allocation2]  }
 0x1e2   :  { %v2645_v24 = vcombine.high %v4330_v1, %v4328_v46  ;;  %v2677_v25 = vcombine.high %v4334_v15, %v4332_v8  ;;  %v1473_v34 = vadd.bf16 %v2745_v7, %v566_v57  ;;  %v1472_v48 = vadd.bf16 %v2744_v17, %v565_v51  ;;  %v4562_v9 = vld [vmem:[#allocation5_spill] sm:$0xff]  ;;  %s2471_s10 = sshll.u32 %s2870_s5, 4  ;;  %s2472_s10 = int_to_ptr.vmem [resolvable:$true] %s2471_s10 }
 0x1e3   :  { %2300 = vmatpush1.bf16.msra.mxu1 %v2638_v62  ;;  %2341 = vmatpush1.bf16.msra.mxu0 %v2670_v3  ;;  %v2644_v31 = vcombine.low %v4330_v1, %v4328_v46  ;;  %v2676_v16 = vcombine.low %v4334_v15, %v4332_v8  ;;  %v1505_v52 = vadd.bf16 %v2777_v0, %v598_v42  ;;  %v4563_v46 = vsub.s32 2, %v4562_v9  ;;  %v4564_v8 = vld [vmem:[#allocation7_spill] sm:$0xff]  ;;  %s2842_s11 = scalar_lea.vmem %s2472_s10, 256  ;;  %p2847_p1 = scmp.lt.s32.totalorder %s2472_s10, %s2472_s10 }
 0x1e4   :  { %2301 = vmatprep.subr.bf16.mxu1 %v2641_v47  ;;  %2342 = vmatprep.subr.bf16.mxu0 %v2673_v23  ;;  %v1504_v37 = vadd.bf16 %v2776_v30, %v597_v29  ;;  %v2647_v13 = vcombine.high %v1470_v40, %v1471_v45  ;;  %v2679_v54 = vcombine.high %v1502_v32, %v1503_v60  ;;  %v4565_v62 = vsub.s32 3, %v4562_v9  ;;  %p2843_p0 = scmp.ne.s32.totalorder %s2472_s10, %s2842_s11  ;;  %p2848_p2 = scmp.lt.s32.totalorder %s2842_s11, %s2842_s11 }
 0x1e5   :  { %v2646_v26 = vcombine.low %v1470_v40, %v1471_v45  ;;  %v2678_v18 = vcombine.low %v1502_v32, %v1503_v60  ;;  %v2649_v36 = vcombine.high %v1472_v48, %v1473_v34  ;;  %v2648_v22 = vcombine.low %v1472_v48, %v1473_v34 }
 0x1e6   :  { %v2681_v35 = vcombine.high %v1504_v37, %v1505_v52  ;;  %v2680_v14 = vcombine.low %v1504_v37, %v1505_v52  ;;  %v1681_v19 = vrot.slane %v30_v59, %v4561_v56  ;;  %v1689_v1 = vrot.slane %v30_v59, %v4563_v46  ;;  %p2849_p3 = por %p2848_p2, %p2847_p1 }
 0x1e7   :  { %2302 = vmatpush1.bf16.msra.mxu1 %v2640_v28  ;;  %2343 = vmatpush1.bf16.msra.mxu0 %v2672_v10  ;;  %v1685_v15 = vrot.slane %v30_v59, %v4564_v8  ;;  %v1693_v3 = vrot.slane %v30_v59, %v4565_v62  ;;  %v4566_v41 = vlaneseq  ;;  %v1956_v45 = vrot.slane %v31_v44, %v4564_v8 }
 0x1e8   :  { %2303 = vmatprep.subr.bf16.mxu1 %v2643_v50  ;;  %2344 = vmatprep.subr.bf16.mxu0 %v2675_v58  ;;  %v1952_v58 = vrot.slane %v31_v44, %v4561_v56  ;;  %p2850_p4 = pnand %p2849_p3, %p2843_p0 }
 0x1e9   :  { %v4407_v50 = vand.u32 127, %v4566_v41 }
 0x1eb   :  { %2304 = vmatpush1.bf16.msra.mxu1 %v2642_v53  ;;  %2345 = vmatpush1.bf16.msra.mxu0 %v2674_v63  ;;  %v4412_v40 = vadd.s32 128, %v4407_v50  ;;  %vm2379_vm4 = vcmp.ge.s32.totalorder %v4407_v50, 51  ;;  %vm2381_vm5 = vcmp.lt.s32.totalorder %v4407_v50, 102  ;;  %vm2366_vm6 = vcmp.lt.s32.totalorder %v4407_v50, 51 }
 0x1ec   :  { %2305 = vmatprep.subr.bf16.mxu1 %v2645_v24  ;;  %2346 = vmatprep.subr.bf16.mxu0 %v2677_v25  ;;  %v2869_v25 = vmov -inf   ;;  %vm2393_vm10 = vcmp.ge.s32.totalorder %v4407_v50, 102  ;;  %vm4426_vm11 = vmand %vm2379_vm4, %vm2381_vm5 }
 0x1ed   :  { %vm2408_vm7 = vcmp.ge.s32.totalorder %v4412_v40, 153  ;;  %vm2410_vm8 = vcmp.lt.s32.totalorder %v4412_v40, 204  ;;  %v2373_v42 = vsel %vm2372_vm3, -1e+30, %v2869_v25  ;;  %vm2396_vm9 = vcmp.lt.s32.totalorder %v4412_v40, 153 }
 0x1ee   :  { %vm4432_vm12 = vmand %vm2408_vm7, %vm2410_vm8 }
 0x1ef   :  { %2306 = vmatpush1.bf16.msra.mxu1 %v2644_v31  ;;  %2347 = vmatpush1.bf16.msra.mxu0 %v2676_v16 }
 0x1f0   :  { %2307 = vmatprep.subr.bf16.mxu1 %v2647_v13  ;;  %2348 = vmatprep.subr.bf16.mxu0 %v2679_v54 }
 0x1f3   :  { %2308 = vmatpush1.bf16.msra.mxu1 %v2646_v26  ;;  %2349 = vmatpush1.bf16.msra.mxu0 %v2678_v18 }
 0x1f4   :  { %2309 = vmatprep.subr.bf16.mxu1 %v2649_v36  ;;  %2350 = vmatprep.subr.bf16.mxu0 %v2681_v35 }
 0x1f7   :  { %2310 = vmatpush1.bf16.msra.mxu1 %v2648_v22  ;;  %2351 = vmatpush1.bf16.msra.mxu0 %v2680_v14 }
 0x28d   :  { %v1892_v43 = vpop.f32.mrb[4].mxu0  ;;  %v1933_v49 = vpop.f32.mrb[4].mxu1 }
 0x28e   :  { %v1893_v61 = vadd.f32 %v1892_v43, %v1681_v19  ;;  %v1934_v47 = vadd.f32 %v1933_v49, %v1689_v1  ;;  %v1894_v23 = vpop.f32.mrb[5].mxu0  ;;  %v1935_v33 = vpop.f32.mrb[5].mxu1 }
 0x28f   :  { %v1895_v27 = vadd.f32 %v1894_v23, %v1685_v15  ;;  %v1936_v11 = vadd.f32 %v1935_v33, %v1693_v3  ;;  %v1896_v2 = vpop.f32.mrb[6].mxu0  ;;  %v1937_v39 = vpop.f32.mrb[6].mxu1 }
 0x290   :  { %v1940_v55 = vmax.f32 %v1893_v61, 0.0  ;;  %v1942_v4 = vmax.f32 %v1934_v47, 0.0  ;;  %v1897_v12 = vpop.f32.mrb[7].mxu0  ;;  %v1938_v5 = vpop.f32.mrb[7].mxu1 }
 0x291   :  { %v1941_v20 = vmax.f32 %v1895_v27, 0.0  ;;  %v1943_v21 = vmax.f32 %v1936_v11, 0.0 }
 0x292   :  { %v1944_v28 = vpack.c.bf16 %v1940_v55, %v1940_v55  ;;  %v1946_v10 = vpack.c.bf16 %v1942_v4, %v1942_v4 }
 0x293   :  { %v1945_v6 = vpack.c.bf16 %v1941_v20, %v1941_v20  ;;  %v1947_v38 = vpack.c.bf16 %v1943_v21, %v1943_v21 }
 0x295   :  { %2311 = vmatprep.mubr.bf16.mxu1 %v1945_v6  ;;  %2352 = vmatprep.mubr.bf16.mxu0 %v1947_v38 }
 0x296   :  { %2312 = vmatmul.mubr.bf16.vlgmr.msra.gmra.mrb[8].mxu1 %v1944_v28  ;;  %2353 = vmatmul.mubr.bf16.vlgmr.msra.gmra.mrb[8].mxu0 %v1946_v10 }
 0x369   :  { %v2313_v60 = vpop.f32.mrb[8].mxu1  ;;  %v2354_v32 = vpop.f32.mrb[8].mxu0 }
 0x36a   :  { %v2314_v7 = vadd.f32 %v2313_v60, %v1952_v58  ;;  %v2315_v17 = vpop.f32.mrb[9].mxu1  ;;  %v2356_v53 = vpop.f32.mrb[9].mxu0 }
 0x36b   :  { %v2316_v63 = vadd.f32 %v2315_v17, %v1956_v45  ;;  %v2317_v57 = vpop.f32.mrb[10].mxu1  ;;  %v2358_v51 = vpop.f32.mrb[10].mxu0 }
 0x36c   :  { %v2355_v0 = vadd.f32 %v2354_v32, %v2314_v7  ;;  %v2318_v30 = vpop.f32.mrb[11].mxu1  ;;  %v2359_v24 = vpop.f32.mrb[11].mxu0 }
 0x36d   :  { %v2357_v29 = vadd.f32 %v2356_v53, %v2316_v63 }
 0x36e   :  { %v2370_v48 = vsel %vm2366_vm6, %v2355_v0, -1e+30  ;;  %v2399_v37 = vsel %vm2393_vm10, %v2355_v0, -1e+30  ;;  %v2385_v54 = vsel %vm4426_vm11, %v2355_v0, -1e+30 }
 0x36f   :  { %v2374_v16 = vmax.f32 %v2370_v48, %v2373_v42  ;;  %v2400_v52 = vsel %vm2396_vm9, %v2357_v29, -1e+30  ;;  %v2414_v18 = vsel %vm4432_vm12, %v2357_v29, -1e+30  ;;  %v2388_v36 = vmax.f32 %v2385_v54, %v2373_v42 }
 0x370   :  { %v2401_v13 = vsel %vm2372_vm3, %v2400_v52, -inf  ;;  %v2415_v35 = vsel %vm2372_vm3, %v2414_v18, -inf }
 0x371   :  { %2375 = vmax.xlane.f32.xlu0 %v2374_v16  ;;  %v2402_v26 = vmax.f32 %v2399_v37, %v2401_v13  ;;  %v2416_v22 = vmax.f32 %v2415_v35, -1e+30 }
 0x373   :  { %2403 = vmax.xlane.f32.xlu1 %v2402_v26 }
 0x375   :  { %2389 = vmax.xlane.f32.xlu0 %v2388_v36 }
 0x379   :  { %2417 = vmax.xlane.f32.xlu0 %v2416_v22 }
 0x3fe   :  { %v2376_v14 = vpop.xlane.xlu0 %2375 }
 0x3ff   :  { %v2377_v59 = vsel %vm2366_vm6, %v2376_v14, 0.0 }
 0x400   :  { %v2404_v19 = vpop.xlane.xlu1 %2403 }
 0x401   :  { %v2406_v8 = vsel %vm2396_vm9, %v2404_v19, 0.0 }
 0x402   :  { %v2390_v56 = vpop.xlane.xlu0 %2389 }
 0x403   :  { %v2391_v9 = vsel %vm4426_vm11, %v2390_v56, %v2377_v59 }
 0x404   :  { %v2405_v46 = vsel %vm2393_vm10, %v2404_v19, %v2391_v9 }
 0x405   :  { %v2421_v1 = vsub.f32 %v2355_v0, %v2405_v46 }
 0x406   :  { %v2418_v15 = vpop.xlane.xlu0 %2417 }
 0x407   :  { %v2423_v62 = vmul.f32 1.442695, %v2421_v1  ;;  %v2420_v3 = vsel %vm4432_vm12, %v2418_v15, %v2406_v8 }
 0x408   :  { %v2422_v43 = vsub.f32 %v2357_v29, %v2420_v3 }
 0x409   :  { %2834 = vpow2.f32 %v2423_v62 }
 0x40a   :  { %v2425_v49 = vmul.f32 1.442695, %v2422_v43 }
 0x40c   :  { %2836 = vpow2.f32 %v2425_v49 }
 0x413   :  { %v2835_v61 = vpop.eup %2834 }
 0x414   :  { %v2435_v47 = vsel %vm4426_vm11, %v2835_v61, 0.0  ;;  %v2427_v23 = vsel %vm2366_vm6, %v2835_v61, 0.0  ;;  %v2443_v39 = vsel %vm2393_vm10, %v2835_v61, 0.0 }
 0x415   :  { %2439 = vadd.xlane.f32.xlu0 %v2435_v47  ;;  %2431 = vadd.xlane.f32.xlu1 %v2427_v23 }
 0x416   :  { %v2837_v33 = vpop.eup %2836 }
 0x417   :  { %v2452_v27 = vsel %vm4432_vm12, %v2837_v33, 0.0  ;;  %v2444_v11 = vsel %vm2396_vm9, %v2837_v33, 0.0 }
 0x418   :  { %v2453_v2 = vsel %vm2372_vm3, %v2452_v27, 0.0  ;;  %v2445_v55 = vsel %vm2372_vm3, %v2444_v11, 0.0 }
 0x419   :  { %2455 = vadd.xlane.f32.xlu0 %v2453_v2  ;;  %v2446_v4 = vadd.f32 %v2445_v55, %v2443_v39 }
 0x41b   :  { %2447 = vadd.xlane.f32.xlu1 %v2446_v4 }
 0x4a2   :  { %v2432_v12 = vpop.xlane.xlu1 %2431  ;;  %v2440_v5 = vpop.xlane.xlu0 %2439 }
 0x4a3   :  { %v2433_v20 = vsel %vm2366_vm6, %v2432_v12, 1.0 }
 0x4a4   :  { %v2441_v21 = vsel %vm4426_vm11, %v2440_v5, %v2433_v20 }
 0x4a6   :  { %v2456_v38 = vpop.xlane.xlu0 %2455 }
 0x4a8   :  { %v2448_v6 = vpop.xlane.xlu1 %2447 }
 0x4a9   :  { %v2449_v28 = vsel %vm2393_vm10, %v2448_v6, %v2441_v21  ;;  %v2450_v10 = vsel %vm2396_vm9, %v2448_v6, 1.0 }
 0x4aa   :  { %v2458_v44 = vsel %vm4432_vm12, %v2456_v38, %v2450_v10  ;;  %2838 = vrcp.f32 %v2449_v28 }
 0x4ab   :  { %2840 = vrcp.f32 %v2458_v44 }
 0x4b4   :  { %v2839_v41 = vpop.eup %2838 }
 0x4b5   :  { %v2841_v58 = vpop.eup %2840  ;;  %v2460_v45 = vmul.f32 %v2839_v41, %v2835_v61 }
 0x4b6   :  { %v2462_v60 = vmul.f32 %v2841_v58, %v2837_v33 }
 0x4b7   :  { %2463 = vst [vmem:[#allocation2] sm:$0xff] %v2460_v45 }
 0x4b8   :  { %2464 = vst.msk [vmem:[#allocation2 + $0x8] sm:$0xff] %vm2372_vm3, %v2462_v60 }
 0x4b9   :  { %2853 = shalt.err (!%p2850_p4)
}
 0x4ba   :  { %s2854_s14 = scalar_lea.hbm %s4498_s7, 256 }
 0x4bb   :  { %p2855_p5 = scmp.ne.s32.totalorder %s4498_s7, %s2854_s14  ;;  %p2858_p6 = scmp.lt.u32.totalorder %s2854_s14, %s4498_s7 }
 0x4bd   :  { %p2860_p7 = pnand %p2858_p6, %p2855_p5 }
 0x4bf   :  { %2863 = shalt.err (!%p2860_p7)
}
 0x4c0   :  { %2474 = dma.vmem_to_hbm [thread:$0]  %s2472_s10, 256, %s4498_s7, [#allocation3]  }
 0x4c1   :  { %2864 = dma.done.wait [#allocation3], 256  }
 0x4c2   :  { %2865 = vsyncadd [#allocation3], 4294967040 }
 0x4c3   :  { %2478 = vsyncpa [#allocation3], 1 }

</bundles_post_ra>
